<compile_context>
chip_gen: v5e
topology: v5e:2x2
jax: 0.10.0
libtpu: 0.0.40
codegen_flags: <defaults>
</compile_context>

<pallas_src>
import functools

import jax
import jax.numpy as jnp
from jax import lax
from jax.experimental import pallas as pl
from jax.experimental.pallas import tpu as pltpu

EXPANSION = 4
BN_EPS = 1e-5
LANE = 128                      # channel dims padded to the lane width
COMPUTE_DTYPE = jnp.bfloat16    # activations / folded weights; accumulation is f32

_TILE_M_TARGET = 512            # row-tile target for the 1x1 channel matmuls
_ACC_BUDGET = 128 * 1024        # f32 accumulator budget (bytes) for the 3x3 conv


def _round_up(x, m):
    return (x + m - 1) // m * m


def _vmem_limits():
    """(vmem_limit_bytes, per-kernel tile budget), derived per generation."""
    cap = None
    try:
        cap = getattr(pltpu.get_tpu_info(), "vmem_capacity_bytes", None)
    except Exception:
        cap = None
    if not cap:
        cap = 64 * 1024 * 1024                          # conservative (v7x per-TC VMEM)
    limit = int(min(cap * 3 // 4, 64 * 1024 * 1024))    # 64 MiB on v5e/v6e, 48 MiB on v7x
    return limit, limit * 3 // 4


_VMEM_LIMIT, _VMEM_BUDGET = _vmem_limits()


def _compiler_params(n_grid_dims):
    return pltpu.CompilerParams(
        dimension_semantics=("parallel",) * n_grid_dims,
        vmem_limit_bytes=_VMEM_LIMIT)


def _tile_cap(stream_row_bytes, resident_bytes):
    """Max rows per tile given double-buffered streams + resident weights."""
    avail = _VMEM_BUDGET - 2 * resident_bytes
    if avail <= 0:
        return 128
    return max(64, avail // (2 * stream_row_bytes))


def _choose_row_tiling(m, cap):
    """Return (tile_m, padded_m) for an M-row channel matmul."""
    cap = int(min(cap, _TILE_M_TARGET))
    cap = max(8, cap - cap % 8)
    if m <= cap:
        mp = _round_up(m, 8)
        return mp, mp
    for t in range(cap, 127, -8):          # largest mult-of-8 divisor -> no row padding
        if m % t == 0:
            return t, m
    return cap, _round_up(m, cap)          # else pad a few rows (cheaper than tiny tiles)


def _pad_rows(x2d, m_pad):
    m = x2d.shape[0]
    if m_pad == m:
        return x2d
    return jnp.pad(x2d, ((0, m_pad - m), (0, 0)))


def _pick_tile_h(ho, wop, cp):
    """Output-row tile for the 3x3 conv; keeps the f32 accumulator vreg-sized."""
    max_th = max(1, _ACC_BUDGET // (wop * cp * 4))
    for t in range(min(max_th, ho), 0, -1):
        if ho % t == 0:
            return t
    return 1


# --------------------------------------------------------------------------
# Pallas kernels
# --------------------------------------------------------------------------
def _mm_bias_kernel(x_ref, w_ref, b_ref, o_ref, *, relu):
    """out = x @ w + bias (BN folded into w), optional ReLU."""
    acc = jnp.dot(x_ref[...], w_ref[...], preferred_element_type=jnp.float32)
    acc = acc + b_ref[...]
    if relu:
        acc = jnp.maximum(acc, 0.0)
    o_ref[...] = acc.astype(o_ref.dtype)


def _mm_bias_add_relu_kernel(x_ref, w_ref, b_ref, r_ref, o_ref):
    """out = relu(x @ w + bias + residual)   (identity shortcut, f32 add)."""
    acc = jnp.dot(x_ref[...], w_ref[...], preferred_element_type=jnp.float32)
    acc = acc + b_ref[...] + r_ref[...].astype(jnp.float32)
    o_ref[...] = jnp.maximum(acc, 0.0).astype(o_ref.dtype)


def _mm_bias_proj_relu_kernel(x_ref, w_ref, b_ref, xs_ref, ws_ref, bs_ref, o_ref):
    """out = relu(x @ w + b + xs @ ws + bs)  (projection shortcut fused)."""
    acc = jnp.dot(x_ref[...], w_ref[...], preferred_element_type=jnp.float32)
    acc = acc + b_ref[...]
    acc = acc + jnp.dot(xs_ref[...], ws_ref[...], preferred_element_type=jnp.float32)
    acc = acc + bs_ref[...]
    o_ref[...] = jnp.maximum(acc, 0.0).astype(o_ref.dtype)


def _conv3x3_kernel(p_ref, w_ref, b_ref, o_ref, *, stride, th, wo, wop):
    """3x3 conv (+BN bias +ReLU) for one image / one row tile of `th` output
    rows, accumulating the 9 taps in-kernel as MXU matmuls.  p_ref holds the
    stride^2 parity planes (stride 2) or the padded image (stride 1), resident
    in VMEM across the row-tile grid axis."""
    cp = w_ref.shape[2]
    row0 = pl.program_id(1) * th
    if th % 8 == 0:
        row0 = pl.multiple_of(row0, 8)
    acc = jnp.zeros((th * wop, cp), jnp.float32)
    t = 0
    for ky in range(3):
        for kx in range(3):
            plane = (ky % stride) * stride + (kx % stride)
            oy, ox = ky // stride, kx // stride
            tap = p_ref[plane, pl.ds(row0 + oy, th), pl.ds(ox, wop), :]   # (th, wop, cp)
            acc = acc + jnp.dot(tap.reshape(th * wop, cp), w_ref[t],
                                preferred_element_type=jnp.float32)
            t += 1
    res = jnp.maximum(acc + b_ref[...], 0.0)
    res = res.reshape(th, wop, cp)[:, :wo, :].astype(o_ref.dtype)
    o_ref[...] = res.reshape(1, th, wo, cp)


# --------------------------------------------------------------------------
# pallas_call wrappers
# --------------------------------------------------------------------------
def matmul_bias(x2d, w, b, *, relu, out_dtype=COMPUTE_DTYPE):
    M, K = x2d.shape
    C = w.shape[1]
    out_bytes = jnp.dtype(out_dtype).itemsize
    resident = w.size * w.dtype.itemsize + b.size * b.dtype.itemsize
    stream_row = K * x2d.dtype.itemsize + C * out_bytes
    tm, m_pad = _choose_row_tiling(M, _tile_cap(stream_row, resident))
    out = pl.pallas_call(
        functools.partial(_mm_bias_kernel, relu=relu),
        out_shape=jax.ShapeDtypeStruct((m_pad, C), out_dtype),
        grid=(m_pad // tm,),
        in_specs=[
            pl.BlockSpec((tm, K), lambda i: (i, 0)),
            pl.BlockSpec((K, C), lambda i: (0, 0)),      # weights stay VMEM-resident
            pl.BlockSpec((1, C), lambda i: (0, 0)),
        ],
        out_specs=pl.BlockSpec((tm, C), lambda i: (i, 0)),
        compiler_params=_compiler_params(1),
    )(_pad_rows(x2d, m_pad), w, b)
    return out[:M] if m_pad != M else out


def matmul_bias_add_relu(x2d, w, b, r2d, *, out_dtype=COMPUTE_DTYPE):
    M, K = x2d.shape
    C = w.shape[1]
    out_bytes = jnp.dtype(out_dtype).itemsize
    resident = w.size * w.dtype.itemsize + b.size * b.dtype.itemsize
    stream_row = K * x2d.dtype.itemsize + C * r2d.dtype.itemsize + C * out_bytes
    tm, m_pad = _choose_row_tiling(M, _tile_cap(stream_row, resident))
    out = pl.pallas_call(
        _mm_bias_add_relu_kernel,
        out_shape=jax.ShapeDtypeStruct((m_pad, C), out_dtype),
        grid=(m_pad // tm,),
        in_specs=[
            pl.BlockSpec((tm, K), lambda i: (i, 0)),
            pl.BlockSpec((K, C), lambda i: (0, 0)),
            pl.BlockSpec((1, C), lambda i: (0, 0)),
            pl.BlockSpec((tm, C), lambda i: (i, 0)),
        ],
        out_specs=pl.BlockSpec((tm, C), lambda i: (i, 0)),
        compiler_params=_compiler_params(1),
    )(_pad_rows(x2d, m_pad), w, b, _pad_rows(r2d, m_pad))
    return out[:M] if m_pad != M else out


def matmul_bias_proj_relu(x2d, w, b, xs2d, ws, bs, *, out_dtype=COMPUTE_DTYPE):
    M, K = x2d.shape
    C = w.shape[1]
    Ks = xs2d.shape[1]
    out_bytes = jnp.dtype(out_dtype).itemsize
    resident = (w.size * w.dtype.itemsize + ws.size * ws.dtype.itemsize
                + b.size * b.dtype.itemsize + bs.size * bs.dtype.itemsize)
    stream_row = (K * x2d.dtype.itemsize + Ks * xs2d.dtype.itemsize + C * out_bytes)
    tm, m_pad = _choose_row_tiling(M, _tile_cap(stream_row, resident))
    out = pl.pallas_call(
        _mm_bias_proj_relu_kernel,
        out_shape=jax.ShapeDtypeStruct((m_pad, C), out_dtype),
        grid=(m_pad // tm,),
        in_specs=[
            pl.BlockSpec((tm, K), lambda i: (i, 0)),
            pl.BlockSpec((K, C), lambda i: (0, 0)),
            pl.BlockSpec((1, C), lambda i: (0, 0)),
            pl.BlockSpec((tm, Ks), lambda i: (i, 0)),
            pl.BlockSpec((Ks, C), lambda i: (0, 0)),
            pl.BlockSpec((1, C), lambda i: (0, 0)),
        ],
        out_specs=pl.BlockSpec((tm, C), lambda i: (i, 0)),
        compiler_params=_compiler_params(1),
    )(_pad_rows(x2d, m_pad), w, b, _pad_rows(xs2d, m_pad), ws, bs)
    return out[:M] if m_pad != M else out


def conv3x3_bn_relu(x_nhwc, w_taps, bias, *, stride, out_dtype=COMPUTE_DTYPE):
    """3x3 conv, stride in {1,2}, padding=1, fused BN bias + ReLU.

    x_nhwc: (N, H, W, Cp) bf16, channels already padded to a LANE multiple.
    w_taps: (9, Cp, Cp) bf16, tap-major (ky, kx), BN scale folded in.
    bias  : (1, Cp) f32.
    """
    assert stride in (1, 2)
    N, H, W, Cp = x_nhwc.shape
    Ho = (H - 1) // stride + 1
    Wo = (W - 1) // stride + 1
    Wop = _round_up(Wo, 8)              # tap/accumulator width (sublane aligned)
    ext = 2 // stride                   # max tap offset within a plane
    Hq = Ho + ext                       # plane height needed by the taps
    Wq = _round_up(Wop + ext, 8)        # plane width (aligned; extra cols are zeros)
    ph = stride * Hq - H - 1            # bottom zero padding (top/left pad = 1)
    pw = stride * Wq - W - 1

    # Single fused pad; stride=1 needs no parity reshuffle at all.
    xp = jnp.pad(x_nhwc, ((0, 0), (1, ph), (1, pw), (0, 0)))
    if stride == 1:
        parity = xp                                            # (N, Hq, Wq, Cp)
        S2 = 1
    else:
        # TODO(synk): have conv1 emit its output directly in this parity layout
        # to remove this restride pass entirely.
        parity = jnp.stack(
            [xp[:, a::2, b::2, :] for a in range(2) for b in range(2)], axis=1)
        S2 = 4
        parity = parity.reshape(N * S2, Hq, Wq, Cp)

    th = _pick_tile_h(Ho, Wop, Cp)
    kern = functools.partial(_conv3x3_kernel, stride=stride, th=th, wo=Wo, wop=Wop)
    return pl.pallas_call(
        kern,
        out_shape=jax.ShapeDtypeStruct((N, Ho, Wo, Cp), out_dtype),
        grid=(N, Ho // th),
        in_specs=[
            pl.BlockSpec((S2, Hq, Wq, Cp), lambda n, r: (n, 0, 0, 0)),  # resident over r
            pl.BlockSpec((9, Cp, Cp), lambda n, r: (0, 0, 0)),
            pl.BlockSpec((1, Cp), lambda n, r: (0, 0)),
        ],
        out_specs=pl.BlockSpec((1, th, Wo, Cp), lambda n, r: (n, r, 0, 0)),
        compiler_params=_compiler_params(2),
    )(parity, w_taps, bias)


# --------------------------------------------------------------------------
# Parameter init (matching the PyTorch module's shapes) and forward pass
# --------------------------------------------------------------------------
def init_bottleneck_params(key, in_planes, planes, stride):
    out_planes = EXPANSION * planes
    keys = jax.random.split(key, 16)

    def conv_w(k, cout, cin, kh, kw):
        return 0.1 * jax.random.normal(k, (cout, cin, kh, kw), jnp.float32)

    def bn(k, c):
        k1, k2, k3, k4 = jax.random.split(k, 4)
        gamma = 1.0 + 0.1 * jax.random.normal(k1, (c,), jnp.float32)
        beta = 0.1 * jax.random.normal(k2, (c,), jnp.float32)
        mean = 0.1 * jax.random.normal(k3, (c,), jnp.float32)
        var = 0.5 + jnp.abs(jax.random.normal(k4, (c,), jnp.float32))
        return gamma, beta, mean, var

    params = {
        "w1": conv_w(keys[0], planes, in_planes, 1, 1),
        "bn1": bn(keys[1], planes),
        "w2": conv_w(keys[2], planes, planes, 3, 3),
        "bn2": bn(keys[3], planes),
        "w3": conv_w(keys[4], out_planes, planes, 1, 1),
        "bn3": bn(keys[5], out_planes),
        "has_shortcut_conv": (stride != 1 or in_planes != out_planes),
        "stride": stride,
    }
    if params["has_shortcut_conv"]:
        params["ws"] = conv_w(keys[6], out_planes, in_planes, 1, 1)
        params["bns"] = bn(keys[7], out_planes)
    return params


def bottleneck_forward(x_nchw, params):
    """Forward pass.  x_nchw: (N, Cin, H, W) float32.  Returns NCHW float32."""
    stride = params["stride"]
    assert stride in (1, 2)
    x = jnp.transpose(x_nchw, (0, 2, 3, 1))          # -> NHWC (once per block)
    N, H, W, Cin = x.shape

    planes = params["w1"].shape[0]
    out_planes = EXPANSION * planes
    Cin_p = _round_up(Cin, LANE)
    Cmid_p = _round_up(planes, LANE)
    Cout_p = _round_up(out_planes, LANE)

    # ---- fold BN (inference) into weights; pad channels; cast to bf16 -------
    def fold_1x1(w_oihw, bn, rows, cols):
        gamma, beta, mean, var = bn
        scale = gamma / jnp.sqrt(var + BN_EPS)
        bias = beta - mean * scale
        w = (w_oihw[:, :, 0, 0] * scale[:, None]).T               # (Cin, Cout)
        w = jnp.pad(w, ((0, rows - w.shape[0]), (0, cols - w.shape[1])))
        b = jnp.pad(bias, (0, cols - bias.shape[0])).reshape(1, cols)
        return w.astype(COMPUTE_DTYPE), b.astype(jnp.float32)

    w1, b1 = fold_1x1(params["w1"], params["bn1"], Cin_p, Cmid_p)
    w3, b3 = fold_1x1(params["w3"], params["bn3"], Cmid_p, Cout_p)

    g2, be2, m2, v2 = params["bn2"]
    s2 = g2 / jnp.sqrt(v2 + BN_EPS)
    b2 = jnp.pad(be2 - m2 * s2, (0, Cmid_p - planes)).reshape(1, Cmid_p)
    b2 = b2.astype(jnp.float32)
    w2 = params["w2"] * s2[:, None, None, None]                   # (Cout, Cin, 3, 3)
    w2 = jnp.transpose(w2, (2, 3, 1, 0)).reshape(9, planes, planes)
    w2 = jnp.pad(w2, ((0, 0), (0, Cmid_p - planes), (0, Cmid_p - planes)))
    w2 = w2.astype(COMPUTE_DTYPE)

    # ---- pad input channels to a lane multiple once; cast to bf16 ----------
    x_p = jnp.pad(x, ((0, 0), (0, 0), (0, 0), (0, Cin_p - Cin))).astype(COMPUTE_DTYPE)

    # conv1 (1x1) + bn1 + relu : tiled channel matmul, weights resident
    out1 = matmul_bias(x_p.reshape(N * H * W, Cin_p), w1, b1, relu=True)
    out1 = out1.reshape(N, H, W, Cmid_p)

    # conv2 (3x3, stride, pad=1) + bn2 + relu : in-kernel 9-tap accumulation,
    # row-tiled so the f32 accumulator stays in vregs
    out2 = conv3x3_bn_relu(out1, w2, b2, stride=stride)
    _, Ho, Wo, _ = out2.shape
    out2_2d = out2.reshape(N * Ho * Wo, Cmid_p)

    # conv3 (1x1) + bn3 + shortcut + relu, fused in a single kernel (bf16 store)
    if params["has_shortcut_conv"]:
        ws, bs = fold_1x1(params["ws"], params["bns"], Cin_p, Cout_p)
        # TODO(synk): if the HLO shows this strided slice as a separate HBM pass,
        # feed the shortcut rows to the fused kernel via an index_map instead.
        xs = x_p[:, ::stride, ::stride, :].reshape(N * Ho * Wo, Cin_p)
        out = matmul_bias_proj_relu(out2_2d, w3, b3, xs, ws, bs)
    else:
        res = x_p.reshape(N * H * W, Cin_p)       # identity: Cin_p == Cout_p
        out = matmul_bias_add_relu(out2_2d, w3, b3, res)

    out = out.reshape(N, Ho, Wo, Cout_p)[:, :, :, :out_planes]
    return jnp.transpose(out, (0, 3, 1, 2)).astype(x_nchw.dtype)   # -> NCHW


# --------------------------------------------------------------------------
# Pure-JAX f32 reference (for a correctness check in __main__)
# --------------------------------------------------------------------------
def bottleneck_reference(x, params):
    stride = params["stride"]

    def conv(a, w, s=1, p=0):
        return lax.conv_general_dilated(
            a, w, window_strides=(s, s), padding=((p, p), (p, p)),
            dimension_numbers=("NCHW", "OIHW", "NCHW"))

    def bn(a, prm):
        gamma, beta, mean, var = prm
        g = gamma / jnp.sqrt(var + BN_EPS)
        return a * g[None, :, None, None] + (beta - mean * g)[None, :, None, None]

    out = jax.nn.relu(bn(conv(x, params["w1"]), params["bn1"]))
    out = jax.nn.relu(bn(conv(out, params["w2"], s=stride, p=1), params["bn2"]))
    out = bn(conv(out, params["w3"]), params["bn3"])
    if params["has_shortcut_conv"]:
        sc = bn(conv(x, params["ws"], s=stride), params["bns"])
    else:
        sc = x
    return jax.nn.relu(out + sc)


if __name__ == "__main__":
    key = jax.random.PRNGKey(0)

    configs = [
        # (N, in_planes, H, W, planes, stride)
        (2, 8, 16, 16, 4, 2),     # projection shortcut (stride 2)
        (2, 16, 16, 16, 4, 1),    # identity shortcut   (stride 1, in == 4*planes)
    ]
    for idx, (N, in_planes, H, W, planes, stride) in enumerate(configs):
        k_x, k_p = jax.random.split(jax.random.fold_in(key, idx))
        x = jax.random.normal(k_x, (N, in_planes, H, W), jnp.float32)
        params = init_bottleneck_params(k_p, in_planes, planes, stride)

        def make_fwd(p):
            @jax.jit
            def fwd(xx):
                return bottleneck_forward(xx, p)
            return fwd

        y = jax.block_until_ready(make_fwd(params)(x))

        Ho = (H - 1) // stride + 1
        expected = (N, EXPANSION * planes, Ho, Ho)
        assert y.shape == expected, (y.shape, expected)
        assert bool(jnp.isfinite(y).all())

        y_ref = bottleneck_reference(x, params)
        err = float(jnp.max(jnp.abs(y - y_ref)))
        assert err < 0.1, f"max abs error {err} vs f32 reference"

    print("KERNEL_OK")
</pallas_src>

<mosaic_0001>
module attributes {stable_mosaic.version = 11 : i64} {
  func.func @_mm_bias_kernel(%arg0: i32, %arg1: memref<512x128xbf16, #tpu.memory_space<vmem>>, %arg2: memref<128x128xbf16, #tpu.memory_space<vmem>>, %arg3: memref<1x128xf32, #tpu.memory_space<vmem>>, %arg4: memref<512x128xbf16, #tpu.memory_space<vmem>>) attributes {dimension_semantics = [#tpu.dimension_semantics<parallel>], iteration_bounds = array<i64: 1>, scalar_prefetch = 0 : i64, scratch_operands = 0 : i64, tpu.core_type = #tpu.core_type<tc>, window_params = [{transform_indices = @transform_0, window_bounds = array<i64: 512, 128>}, {pipeline_mode = #tpu.pipeline_mode<synchronous>, transform_indices = @transform_1, window_bounds = array<i64: 128, 128>}, {pipeline_mode = #tpu.pipeline_mode<synchronous>, transform_indices = @transform_2, window_bounds = array<i64: 1, 128>}, {transform_indices = @transform_3, window_bounds = array<i64: 512, 128>}]} {
    %c0 = arith.constant 0 : index
    %c0_0 = arith.constant 0 : index
    %0 = vector.load %arg1[%c0, %c0_0] : memref<512x128xbf16, #tpu.memory_space<vmem>>, vector<512x128xbf16>
    %c0_1 = arith.constant 0 : index
    %c0_2 = arith.constant 0 : index
    %1 = vector.load %arg2[%c0_1, %c0_2] : memref<128x128xbf16, #tpu.memory_space<vmem>>, vector<128x128xbf16>
    %cst = arith.constant dense<0.000000e+00> : vector<512x128xf32>
    %2 = tpu.matmul %0, %1, %cst {dimension_numbers = #tpu.dot_dimension_numbers<[1], [0], [0], [1], [0, 0, 1, 1], [], []>} : vector<512x128xbf16>, vector<128x128xbf16>, vector<512x128xf32> -> vector<512x128xf32>
    %c0_3 = arith.constant 0 : index
    %c0_4 = arith.constant 0 : index
    %3 = vector.load %arg3[%c0_3, %c0_4] : memref<1x128xf32, #tpu.memory_space<vmem>>, vector<1x128xf32>
    %4 = vector.broadcast %3 : vector<1x128xf32> to vector<512x128xf32>
    %5 = arith.addf %2, %4 : vector<512x128xf32>
    %cst_5 = arith.constant 0.000000e+00 : f32
    %6 = vector.broadcast %cst_5 : f32 to vector<512x128xf32>
    %7 = arith.maximumf %5, %6 : vector<512x128xf32>
    %8 = arith.truncf %7 : vector<512x128xf32> to vector<512x128xbf16>
    %c0_6 = arith.constant 0 : index
    %c0_7 = arith.constant 0 : index
    %9 = vector.load %arg4[%c0_6, %c0_7] : memref<512x128xbf16, #tpu.memory_space<vmem>>, vector<512x128xbf16>
    tpu.vector_store %arg4[%c0_6, %c0_7], %8 {strides = array<i32>} : memref<512x128xbf16, #tpu.memory_space<vmem>>, vector<512x128xbf16>,
    return
  }
  func.func @transform_0(%arg0: i32) -> (i32, i32) {
    %c0_i32 = arith.constant 0 : i32
    %c0_i32_0 = arith.constant 0 : i32
    return %arg0, %c0_i32 : i32, i32
  }
  func.func @transform_1(%arg0: i32) -> (i32, i32) {
    %c0_i32 = arith.constant 0 : i32
    %c0_i32_0 = arith.constant 0 : i32
    %c0_i32_1 = arith.constant 0 : i32
    return %c0_i32, %c0_i32_0 : i32, i32
  }
  func.func @transform_2(%arg0: i32) -> (i32, i32) {
    %c0_i32 = arith.constant 0 : i32
    %c0_i32_0 = arith.constant 0 : i32
    %c0_i32_1 = arith.constant 0 : i32
    return %c0_i32, %c0_i32_0 : i32, i32
  }
  func.func @transform_3(%arg0: i32) -> (i32, i32) {
    %c0_i32 = arith.constant 0 : i32
    %c0_i32_0 = arith.constant 0 : i32
    return %arg0, %c0_i32 : i32, i32
  }
}

module attributes {stable_mosaic.version = 11 : i64} {
  func.func @_conv3x3_kernel(%arg0: i32, %arg1: i32, %arg2: memref<4x9x16x128xbf16, #tpu.memory_space<vmem>>, %arg3: memref<9x128x128xbf16, #tpu.memory_space<vmem>>, %arg4: memref<1x128xf32, #tpu.memory_space<vmem>>, %arg5: memref<1x8x8x128xbf16, #tpu.memory_space<vmem>>) attributes {dimension_semantics = [#tpu.dimension_semantics<parallel>, #tpu.dimension_semantics<parallel>], iteration_bounds = array<i64: 2, 1>, scalar_prefetch = 0 : i64, scratch_operands = 0 : i64, tpu.core_type = #tpu.core_type<tc>, window_params = [{transform_indices = @transform_0, window_bounds = array<i64: 4, 9, 16, 128>}, {pipeline_mode = #tpu.pipeline_mode<synchronous>, transform_indices = @transform_1, window_bounds = array<i64: 9, 128, 128>}, {pipeline_mode = #tpu.pipeline_mode<synchronous>, transform_indices = @transform_2, window_bounds = array<i64: 1, 128>}, {transform_indices = @transform_3, window_bounds = array<i64: 1, 8, 8, 128>}]} {
    %c8_i32 = arith.constant 8 : i32
    %0 = arith.muli %arg1, %c8_i32 : i32
    %1 = tpu.assume_multiple %0, 8 : i32
    %cst = arith.constant 0.000000e+00 : f32
    %2 = vector.broadcast %cst : f32 to vector<64x128xf32>
    %c0_i32 = arith.constant 0 : i32
    %3 = arith.addi %1, %c0_i32 : i32
    %c0 = arith.constant 0 : index
    %4 = arith.index_cast %3 : i32 to index
    %c0_0 = arith.constant 0 : index
    %c0_1 = arith.constant 0 : index
    %5 = vector.load %arg2[%c0, %4, %c0_0, %c0_1] : memref<4x9x16x128xbf16, #tpu.memory_space<vmem>>, vector<1x8x8x128xbf16>
    %6 = vector.shape_cast %5 : vector<1x8x8x128xbf16> to vector<8x8x128xbf16>
    %7 = vector.shape_cast %6 : vector<8x8x128xbf16> to vector<64x128xbf16>
    %c0_2 = arith.constant 0 : index
    %c0_3 = arith.constant 0 : index
    %c0_4 = arith.constant 0 : index
    %8 = vector.load %arg3[%c0_2, %c0_3, %c0_4] : memref<9x128x128xbf16, #tpu.memory_space<vmem>>, vector<1x128x128xbf16>
    %9 = vector.shape_cast %8 : vector<1x128x128xbf16> to vector<128x128xbf16>
    %cst_5 = arith.constant dense<0.000000e+00> : vector<64x128xf32>
    %10 = tpu.matmul %7, %9, %cst_5 {dimension_numbers = #tpu.dot_dimension_numbers<[1], [0], [0], [1], [0, 0, 1, 1], [], []>} : vector<64x128xbf16>, vector<128x128xbf16>, vector<64x128xf32> -> vector<64x128xf32>
    %11 = arith.addf %2, %10 : vector<64x128xf32>
    %c0_i32_6 = arith.constant 0 : i32
    %12 = arith.addi %1, %c0_i32_6 : i32
    %c1 = arith.constant 1 : index
    %13 = arith.index_cast %12 : i32 to index
    %c0_7 = arith.constant 0 : index
    %c0_8 = arith.constant 0 : index
    %14 = vector.load %arg2[%c1, %13, %c0_7, %c0_8] : memref<4x9x16x128xbf16, #tpu.memory_space<vmem>>, vector<1x8x8x128xbf16>
    %15 = vector.shape_cast %14 : vector<1x8x8x128xbf16> to vector<8x8x128xbf16>
    %16 = vector.shape_cast %15 : vector<8x8x128xbf16> to vector<64x128xbf16>
    %c1_9 = arith.constant 1 : index
    %c0_10 = arith.constant 0 : index
    %c0_11 = arith.constant 0 : index
    %17 = vector.load %arg3[%c1_9, %c0_10, %c0_11] : memref<9x128x128xbf16, #tpu.memory_space<vmem>>, vector<1x128x128xbf16>
    %18 = vector.shape_cast %17 : vector<1x128x128xbf16> to vector<128x128xbf16>
    %cst_12 = arith.constant dense<0.000000e+00> : vector<64x128xf32>
    %19 = tpu.matmul %16, %18, %cst_12 {dimension_numbers = #tpu.dot_dimension_numbers<[1], [0], [0], [1], [0, 0, 1, 1], [], []>} : vector<64x128xbf16>, vector<128x128xbf16>, vector<64x128xf32> -> vector<64x128xf32>
    %20 = arith.addf %11, %19 : vector<64x128xf32>
    %c0_i32_13 = arith.constant 0 : i32
    %21 = arith.addi %1, %c0_i32_13 : i32
    %c0_14 = arith.constant 0 : index
    %22 = arith.index_cast %21 : i32 to index
    %c1_15 = arith.constant 1 : index
    %c0_16 = arith.constant 0 : index
    %23 = vector.load %arg2[%c0_14, %22, %c1_15, %c0_16] : memref<4x9x16x128xbf16, #tpu.memory_space<vmem>>, vector<1x8x8x128xbf16>
    %24 = vector.shape_cast %23 : vector<1x8x8x128xbf16> to vector<8x8x128xbf16>
    %25 = vector.shape_cast %24 : vector<8x8x128xbf16> to vector<64x128xbf16>
    %c2 = arith.constant 2 : index
    %c0_17 = arith.constant 0 : index
    %c0_18 = arith.constant 0 : index
    %26 = vector.load %arg3[%c2, %c0_17, %c0_18] : memref<9x128x128xbf16, #tpu.memory_space<vmem>>, vector<1x128x128xbf16>
    %27 = vector.shape_cast %26 : vector<1x128x128xbf16> to vector<128x128xbf16>
    %cst_19 = arith.constant dense<0.000000e+00> : vector<64x128xf32>
    %28 = tpu.matmul %25, %27, %cst_19 {dimension_numbers = #tpu.dot_dimension_numbers<[1], [0], [0], [1], [0, 0, 1, 1], [], []>} : vector<64x128xbf16>, vector<128x128xbf16>, vector<64x128xf32> -> vector<64x128xf32>
    %29 = arith.addf %20, %28 : vector<64x128xf32>
    %c0_i32_20 = arith.constant 0 : i32
    %30 = arith.addi %1, %c0_i32_20 : i32
    %c2_21 = arith.constant 2 : index
    %31 = arith.index_cast %30 : i32 to index
    %c0_22 = arith.constant 0 : index
    %c0_23 = arith.constant 0 : index
    %32 = vector.load %arg2[%c2_21, %31, %c0_22, %c0_23] : memref<4x9x16x128xbf16, #tpu.memory_space<vmem>>, vector<1x8x8x128xbf16>
    %33 = vector.shape_cast %32 : vector<1x8x8x128xbf16> to vector<8x8x128xbf16>
    %34 = vector.shape_cast %33 : vector<8x8x128xbf16> to vector<64x128xbf16>
    %c3 = arith.constant 3 : index
    %c0_24 = arith.constant 0 : index
    %c0_25 = arith.constant 0 : index
    %35 = vector.load %arg3[%c3, %c0_24, %c0_25] : memref<9x128x128xbf16, #tpu.memory_space<vmem>>, vector<1x128x128xbf16>
    %36 = vector.shape_cast %35 : vector<1x128x128xbf16> to vector<128x128xbf16>
    %cst_26 = arith.constant dense<0.000000e+00> : vector<64x128xf32>
    %37 = tpu.matmul %34, %36, %cst_26 {dimension_numbers = #tpu.dot_dimension_numbers<[1], [0], [0], [1], [0, 0, 1, 1], [], []>} : vector<64x128xbf16>, vector<128x128xbf16>, vector<64x128xf32> -> vector<64x128xf32>
    %38 = arith.addf %29, %37 : vector<64x128xf32>
    %c0_i32_27 = arith.constant 0 : i32
    %39 = arith.addi %1, %c0_i32_27 : i32
    %c3_28 = arith.constant 3 : index
    %40 = arith.index_cast %39 : i32 to index
    %c0_29 = arith.constant 0 : index
    %c0_30 = arith.constant 0 : index
    %41 = vector.load %arg2[%c3_28, %40, %c0_29, %c0_30] : memref<4x9x16x128xbf16, #tpu.memory_space<vmem>>, vector<1x8x8x128xbf16>
    %42 = vector.shape_cast %41 : vector<1x8x8x128xbf16> to vector<8x8x128xbf16>
    %43 = vector.shape_cast %42 : vector<8x8x128xbf16> to vector<64x128xbf16>
    %c4 = arith.constant 4 : index
    %c0_31 = arith.constant 0 : index
    %c0_32 = arith.constant 0 : index
    %44 = vector.load %arg3[%c4, %c0_31, %c0_32] : memref<9x128x128xbf16, #tpu.memory_space<vmem>>, vector<1x128x128xbf16>
    %45 = vector.shape_cast %44 : vector<1x128x128xbf16> to vector<128x128xbf16>
    %cst_33 = arith.constant dense<0.000000e+00> : vector<64x128xf32>
    %46 = tpu.matmul %43, %45, %cst_33 {dimension_numbers = #tpu.dot_dimension_numbers<[1], [0], [0], [1], [0, 0, 1, 1], [], []>} : vector<64x128xbf16>, vector<128x128xbf16>, vector<64x128xf32> -> vector<64x128xf32>
    %47 = arith.addf %38, %46 : vector<64x128xf32>
    %c0_i32_34 = arith.constant 0 : i32
    %48 = arith.addi %1, %c0_i32_34 : i32
    %c2_35 = arith.constant 2 : index
    %49 = arith.index_cast %48 : i32 to index
    %c1_36 = arith.constant 1 : index
    %c0_37 = arith.constant 0 : index
    %50 = vector.load %arg2[%c2_35, %49, %c1_36, %c0_37] : memref<4x9x16x128xbf16, #tpu.memory_space<vmem>>, vector<1x8x8x128xbf16>
    %51 = vector.shape_cast %50 : vector<1x8x8x128xbf16> to vector<8x8x128xbf16>
    %52 = vector.shape_cast %51 : vector<8x8x128xbf16> to vector<64x128xbf16>
    %c5 = arith.constant 5 : index
    %c0_38 = arith.constant 0 : index
    %c0_39 = arith.constant 0 : index
    %53 = vector.load %arg3[%c5, %c0_38, %c0_39] : memref<9x128x128xbf16, #tpu.memory_space<vmem>>, vector<1x128x128xbf16>
    %54 = vector.shape_cast %53 : vector<1x128x128xbf16> to vector<128x128xbf16>
    %cst_40 = arith.constant dense<0.000000e+00> : vector<64x128xf32>
    %55 = tpu.matmul %52, %54, %cst_40 {dimension_numbers = #tpu.dot_dimension_numbers<[1], [0], [0], [1], [0, 0, 1, 1], [], []>} : vector<64x128xbf16>, vector<128x128xbf16>, vector<64x128xf32> -> vector<64x128xf32>
    %56 = arith.addf %47, %55 : vector<64x128xf32>
    %c1_i32 = arith.constant 1 : i32
    %57 = arith.addi %1, %c1_i32 : i32
    %c0_41 = arith.constant 0 : index
    %58 = arith.index_cast %57 : i32 to index
    %c0_42 = arith.constant 0 : index
    %c0_43 = arith.constant 0 : index
    %59 = vector.load %arg2[%c0_41, %58, %c0_42, %c0_43] : memref<4x9x16x128xbf16, #tpu.memory_space<vmem>>, vector<1x8x8x128xbf16>
    %60 = vector.shape_cast %59 : vector<1x8x8x128xbf16> to vector<8x8x128xbf16>
    %61 = vector.shape_cast %60 : vector<8x8x128xbf16> to vector<64x128xbf16>
    %c6 = arith.constant 6 : index
    %c0_44 = arith.constant 0 : index
    %c0_45 = arith.constant 0 : index
    %62 = vector.load %arg3[%c6, %c0_44, %c0_45] : memref<9x128x128xbf16, #tpu.memory_space<vmem>>, vector<1x128x128xbf16>
    %63 = vector.shape_cast %62 : vector<1x128x128xbf16> to vector<128x128xbf16>
    %cst_46 = arith.constant dense<0.000000e+00> : vector<64x128xf32>
    %64 = tpu.matmul %61, %63, %cst_46 {dimension_numbers = #tpu.dot_dimension_numbers<[1], [0], [0], [1], [0, 0, 1, 1], [], []>} : vector<64x128xbf16>, vector<128x128xbf16>, vector<64x128xf32> -> vector<64x128xf32>
    %65 = arith.addf %56, %64 : vector<64x128xf32>
    %c1_i32_47 = arith.constant 1 : i32
    %66 = arith.addi %1, %c1_i32_47 : i32
    %c1_48 = arith.constant 1 : index
    %67 = arith.index_cast %66 : i32 to index
    %c0_49 = arith.constant 0 : index
    %c0_50 = arith.constant 0 : index
    %68 = vector.load %arg2[%c1_48, %67, %c0_49, %c0_50] : memref<4x9x16x128xbf16, #tpu.memory_space<vmem>>, vector<1x8x8x128xbf16>
    %69 = vector.shape_cast %68 : vector<1x8x8x128xbf16> to vector<8x8x128xbf16>
    %70 = vector.shape_cast %69 : vector<8x8x128xbf16> to vector<64x128xbf16>
    %c7 = arith.constant 7 : index
    %c0_51 = arith.constant 0 : index
    %c0_52 = arith.constant 0 : index
    %71 = vector.load %arg3[%c7, %c0_51, %c0_52] : memref<9x128x128xbf16, #tpu.memory_space<vmem>>, vector<1x128x128xbf16>
    %72 = vector.shape_cast %71 : vector<1x128x128xbf16> to vector<128x128xbf16>
    %cst_53 = arith.constant dense<0.000000e+00> : vector<64x128xf32>
    %73 = tpu.matmul %70, %72, %cst_53 {dimension_numbers = #tpu.dot_dimension_numbers<[1], [0], [0], [1], [0, 0, 1, 1], [], []>} : vector<64x128xbf16>, vector<128x128xbf16>, vector<64x128xf32> -> vector<64x128xf32>
    %74 = arith.addf %65, %73 : vector<64x128xf32>
    %c1_i32_54 = arith.constant 1 : i32
    %75 = arith.addi %1, %c1_i32_54 : i32
    %c0_55 = arith.constant 0 : index
    %76 = arith.index_cast %75 : i32 to index
    %c1_56 = arith.constant 1 : index
    %c0_57 = arith.constant 0 : index
    %77 = vector.load %arg2[%c0_55, %76, %c1_56, %c0_57] : memref<4x9x16x128xbf16, #tpu.memory_space<vmem>>, vector<1x8x8x128xbf16>
    %78 = vector.shape_cast %77 : vector<1x8x8x128xbf16> to vector<8x8x128xbf16>
    %79 = vector.shape_cast %78 : vector<8x8x128xbf16> to vector<64x128xbf16>
    %c8 = arith.constant 8 : index
    %c0_58 = arith.constant 0 : index
    %c0_59 = arith.constant 0 : index
    %80 = vector.load %arg3[%c8, %c0_58, %c0_59] : memref<9x128x128xbf16, #tpu.memory_space<vmem>>, vector<1x128x128xbf16>
    %81 = vector.shape_cast %80 : vector<1x128x128xbf16> to vector<128x128xbf16>
    %cst_60 = arith.constant dense<0.000000e+00> : vector<64x128xf32>
    %82 = tpu.matmul %79, %81, %cst_60 {dimension_numbers = #tpu.dot_dimension_numbers<[1], [0], [0], [1], [0, 0, 1, 1], [], []>} : vector<64x128xbf16>, vector<128x128xbf16>, vector<64x128xf32> -> vector<64x128xf32>
    %83 = arith.addf %74, %82 : vector<64x128xf32>
    %c0_61 = arith.constant 0 : index
    %c0_62 = arith.constant 0 : index
    %84 = vector.load %arg4[%c0_61, %c0_62] : memref<1x128xf32, #tpu.memory_space<vmem>>, vector<1x128xf32>
    %85 = vector.broadcast %84 : vector<1x128xf32> to vector<64x128xf32>
    %86 = arith.addf %83, %85 : vector<64x128xf32>
    %cst_63 = arith.constant 0.000000e+00 : f32
    %87 = vector.broadcast %cst_63 : f32 to vector<64x128xf32>
    %88 = arith.maximumf %86, %87 : vector<64x128xf32>
    %89 = vector.shape_cast %88 : vector<64x128xf32> to vector<8x8x128xf32>
    %90 = arith.truncf %89 : vector<8x8x128xf32> to vector<8x8x128xbf16>
    %91 = vector.shape_cast %90 : vector<8x8x128xbf16> to vector<1x8x8x128xbf16>
    %c0_64 = arith.constant 0 : index
    %c0_65 = arith.constant 0 : index
    %c0_66 = arith.constant 0 : index
    %c0_67 = arith.constant 0 : index
    %92 = vector.load %arg5[%c0_64, %c0_65, %c0_66, %c0_67] : memref<1x8x8x128xbf16, #tpu.memory_space<vmem>>, vector<1x8x8x128xbf16>
    tpu.vector_store %arg5[%c0_64, %c0_65, %c0_66, %c0_67], %91 {strides = array<i32>} : memref<1x8x8x128xbf16, #tpu.memory_space<vmem>>, vector<1x8x8x128xbf16>,
    return
  }
  func.func @transform_0(%arg0: i32, %arg1: i32) -> (i32, i32, i32, i32) {
    %c0_i32 = arith.constant 0 : i32
    %c0_i32_0 = arith.constant 0 : i32
    %c0_i32_1 = arith.constant 0 : i32
    %c0_i32_2 = arith.constant 0 : i32
    return %arg0, %c0_i32, %c0_i32_0, %c0_i32_1 : i32, i32, i32, i32
  }
  func.func @transform_1(%arg0: i32, %arg1: i32) -> (i32, i32, i32) {
    %c0_i32 = arith.constant 0 : i32
    %c0_i32_0 = arith.constant 0 : i32
    %c0_i32_1 = arith.constant 0 : i32
    %c0_i32_2 = arith.constant 0 : i32
    return %c0_i32, %c0_i32_0, %c0_i32_1 : i32, i32, i32
  }
  func.func @transform_2(%arg0: i32, %arg1: i32) -> (i32, i32) {
    %c0_i32 = arith.constant 0 : i32
    %c0_i32_0 = arith.constant 0 : i32
    %c0_i32_1 = arith.constant 0 : i32
    return %c0_i32, %c0_i32_0 : i32, i32
  }
  func.func @transform_3(%arg0: i32, %arg1: i32) -> (i32, i32, i32, i32) {
    %c0_i32 = arith.constant 0 : i32
    %c0_i32_0 = arith.constant 0 : i32
    %c0_i32_1 = arith.constant 0 : i32
    return %arg0, %arg1, %c0_i32, %c0_i32_0 : i32, i32, i32, i32
  }
}

module attributes {stable_mosaic.version = 11 : i64} {
  func.func @_mm_bias_proj_relu_kernel(%arg0: i32, %arg1: memref<128x128xbf16, #tpu.memory_space<vmem>>, %arg2: memref<128x128xbf16, #tpu.memory_space<vmem>>, %arg3: memref<1x128xf32, #tpu.memory_space<vmem>>, %arg4: memref<128x128xbf16, #tpu.memory_space<vmem>>, %arg5: memref<128x128xbf16, #tpu.memory_space<vmem>>, %arg6: memref<1x128xf32, #tpu.memory_space<vmem>>, %arg7: memref<128x128xbf16, #tpu.memory_space<vmem>>) attributes {dimension_semantics = [#tpu.dimension_semantics<parallel>], iteration_bounds = array<i64: 1>, scalar_prefetch = 0 : i64, scratch_operands = 0 : i64, tpu.core_type = #tpu.core_type<tc>, window_params = [{transform_indices = @transform_0, window_bounds = array<i64: 128, 128>}, {pipeline_mode = #tpu.pipeline_mode<synchronous>, transform_indices = @transform_1, window_bounds = array<i64: 128, 128>}, {pipeline_mode = #tpu.pipeline_mode<synchronous>, transform_indices = @transform_2, window_bounds = array<i64: 1, 128>}, {transform_indices = @transform_3, window_bounds = array<i64: 128, 128>}, {pipeline_mode = #tpu.pipeline_mode<synchronous>, transform_indices = @transform_4, window_bounds = array<i64: 128, 128>}, {pipeline_mode = #tpu.pipeline_mode<synchronous>, transform_indices = @transform_5, window_bounds = array<i64: 1, 128>}, {transform_indices = @transform_6, window_bounds = array<i64: 128, 128>}]} {
    %c0 = arith.constant 0 : index
    %c0_0 = arith.constant 0 : index
    %0 = vector.load %arg1[%c0, %c0_0] : memref<128x128xbf16, #tpu.memory_space<vmem>>, vector<128x128xbf16>
    %c0_1 = arith.constant 0 : index
    %c0_2 = arith.constant 0 : index
    %1 = vector.load %arg2[%c0_1, %c0_2] : memref<128x128xbf16, #tpu.memory_space<vmem>>, vector<128x128xbf16>
    %cst = arith.constant dense<0.000000e+00> : vector<128x128xf32>
    %2 = tpu.matmul %0, %1, %cst {dimension_numbers = #tpu.dot_dimension_numbers<[1], [0], [0], [1], [0, 0, 1, 1], [], []>} : vector<128x128xbf16>, vector<128x128xbf16>, vector<128x128xf32> -> vector<128x128xf32>
    %c0_3 = arith.constant 0 : index
    %c0_4 = arith.constant 0 : index
    %3 = vector.load %arg3[%c0_3, %c0_4] : memref<1x128xf32, #tpu.memory_space<vmem>>, vector<1x128xf32>
    %4 = vector.broadcast %3 : vector<1x128xf32> to vector<128x128xf32>
    %5 = arith.addf %2, %4 : vector<128x128xf32>
    %c0_5 = arith.constant 0 : index
    %c0_6 = arith.constant 0 : index
    %6 = vector.load %arg4[%c0_5, %c0_6] : memref<128x128xbf16, #tpu.memory_space<vmem>>, vector<128x128xbf16>
    %c0_7 = arith.constant 0 : index
    %c0_8 = arith.constant 0 : index
    %7 = vector.load %arg5[%c0_7, %c0_8] : memref<128x128xbf16, #tpu.memory_space<vmem>>, vector<128x128xbf16>
    %cst_9 = arith.constant dense<0.000000e+00> : vector<128x128xf32>
    %8 = tpu.matmul %6, %7, %cst_9 {dimension_numbers = #tpu.dot_dimension_numbers<[1], [0], [0], [1], [0, 0, 1, 1], [], []>} : vector<128x128xbf16>, vector<128x128xbf16>, vector<128x128xf32> -> vector<128x128xf32>
    %9 = arith.addf %5, %8 : vector<128x128xf32>
    %c0_10 = arith.constant 0 : index
    %c0_11 = arith.constant 0 : index
    %10 = vector.load %arg6[%c0_10, %c0_11] : memref<1x128xf32, #tpu.memory_space<vmem>>, vector<1x128xf32>
    %11 = vector.broadcast %10 : vector<1x128xf32> to vector<128x128xf32>
    %12 = arith.addf %9, %11 : vector<128x128xf32>
    %cst_12 = arith.constant 0.000000e+00 : f32
    %13 = vector.broadcast %cst_12 : f32 to vector<128x128xf32>
    %14 = arith.maximumf %12, %13 : vector<128x128xf32>
    %15 = arith.truncf %14 : vector<128x128xf32> to vector<128x128xbf16>
    %c0_13 = arith.constant 0 : index
    %c0_14 = arith.constant 0 : index
    %16 = vector.load %arg7[%c0_13, %c0_14] : memref<128x128xbf16, #tpu.memory_space<vmem>>, vector<128x128xbf16>
    tpu.vector_store %arg7[%c0_13, %c0_14], %15 {strides = array<i32>} : memref<128x128xbf16, #tpu.memory_space<vmem>>, vector<128x128xbf16>,
    return
  }
  func.func @transform_0(%arg0: i32) -> (i32, i32) {
    %c0_i32 = arith.constant 0 : i32
    %c0_i32_0 = arith.constant 0 : i32
    return %arg0, %c0_i32 : i32, i32
  }
  func.func @transform_1(%arg0: i32) -> (i32, i32) {
    %c0_i32 = arith.constant 0 : i32
    %c0_i32_0 = arith.constant 0 : i32
    %c0_i32_1 = arith.constant 0 : i32
    return %c0_i32, %c0_i32_0 : i32, i32
  }
  func.func @transform_2(%arg0: i32) -> (i32, i32) {
    %c0_i32 = arith.constant 0 : i32
    %c0_i32_0 = arith.constant 0 : i32
    %c0_i32_1 = arith.constant 0 : i32
    return %c0_i32, %c0_i32_0 : i32, i32
  }
  func.func @transform_3(%arg0: i32) -> (i32, i32) {
    %c0_i32 = arith.constant 0 : i32
    %c0_i32_0 = arith.constant 0 : i32
    return %arg0, %c0_i32 : i32, i32
  }
  func.func @transform_4(%arg0: i32) -> (i32, i32) {
    %c0_i32 = arith.constant 0 : i32
    %c0_i32_0 = arith.constant 0 : i32
    %c0_i32_1 = arith.constant 0 : i32
    return %c0_i32, %c0_i32_0 : i32, i32
  }
  func.func @transform_5(%arg0: i32) -> (i32, i32) {
    %c0_i32 = arith.constant 0 : i32
    %c0_i32_0 = arith.constant 0 : i32
    %c0_i32_1 = arith.constant 0 : i32
    return %c0_i32, %c0_i32_0 : i32, i32
  }
  func.func @transform_6(%arg0: i32) -> (i32, i32) {
    %c0_i32 = arith.constant 0 : i32
    %c0_i32_0 = arith.constant 0 : i32
    return %arg0, %c0_i32 : i32, i32
  }
}

</mosaic_0001>

<bundles_post_ra>
// kernel: fwd.3
= control target key start
LH: loop header
LB: loop body
LE: loop exit
PB: predicated region body
PF: predicated region fallthrough
CT: control target
= control target key end

     0   :  { %s1424_s1 = inlined_call_operand.vmem [shape: bf16[128,128], index: 1, kind: input, shape index: {}]   ;;  %s1425_s2 = inlined_call_operand.vmem [shape: f32[1,128], index: 2, kind: input, shape index: {}]   ;;  %s1426_s0 = inlined_call_operand.vmem [shape: bf16[512,128], index: 0, kind: input, shape index: {}]   ;;  %s1427_s3 = inlined_call_operand.vmem [shape: bf16[512,128], index: 3, kind: output, shape index: {}]  }
   0x1   :  { %v902_v0 = vld [vmem:[%s1424_s1 + $0x38] sm:$0xff]  ;;  %v901_v1 = vld [vmem:[%s1424_s1 + $0x30] sm:$0xff]  ;;  %v900_v2 = vld [vmem:[%s1424_s1 + $0x28] sm:$0xff] }
   0x2   :  { %338 = vmatpush.bf16.msra.mxu0 %v902_v0  ;;  %1094 = vmatpush.bf16.msra.mxu1 %v902_v0  ;;  %v899_v3 = vld [vmem:[%s1424_s1 + $0x20] sm:$0xff]  ;;  %v898_v4 = vld [vmem:[%s1424_s1 + $0x18] sm:$0xff]  ;;  %v897_v5 = vld [vmem:[%s1424_s1 + $0x10] sm:$0xff] }
   0x3   :  { %1095 = vmatpush.bf16.msra.mxu2 %v902_v0  ;;  %1096 = vmatpush.bf16.msra.mxu3 %v902_v0  ;;  %v896_v6 = vld [vmem:[%s1424_s1 + $0x8] sm:$0xff]  ;;  %v895_v7 = vld [vmem:[%s1424_s1] sm:$0xff]  ;;  %v865_v16 = vld [vmem:[%s1426_s0 + $0x10] sm:$0xff] }
   0x4   :  { %v863_v8 = vld [vmem:[%s1426_s0] sm:$0xff]  ;;  %v864_v12 = vld [vmem:[%s1426_s0 + $0x8] sm:$0xff]  ;;  %v873_v17 = vld [vmem:[%s1426_s0 + $0x50] sm:$0xff] }
   0x5   :  { %v871_v9 = vld [vmem:[%s1426_s0 + $0x40] sm:$0xff]  ;;  %v872_v13 = vld [vmem:[%s1426_s0 + $0x48] sm:$0xff]  ;;  %v881_v18 = vld [vmem:[%s1426_s0 + $0x90] sm:$0xff] }
   0x6   :  { %339 = vmatpush.bf16.msra.mxu0 %v901_v1  ;;  %1097 = vmatpush.bf16.msra.mxu1 %v901_v1  ;;  %v879_v10 = vld [vmem:[%s1426_s0 + $0x80] sm:$0xff]  ;;  %v880_v14 = vld [vmem:[%s1426_s0 + $0x88] sm:$0xff]  ;;  %v889_v19 = vld [vmem:[%s1426_s0 + $0xd0] sm:$0xff] }
   0x7   :  { %1098 = vmatpush.bf16.msra.mxu2 %v901_v1  ;;  %1099 = vmatpush.bf16.msra.mxu3 %v901_v1  ;;  %v887_v11 = vld [vmem:[%s1426_s0 + $0xc0] sm:$0xff]  ;;  %v888_v15 = vld [vmem:[%s1426_s0 + $0xc8] sm:$0xff]  ;;  %v866_v20 = vld [vmem:[%s1426_s0 + $0x18] sm:$0xff] }
   0x8   :  { %v874_v21 = vld [vmem:[%s1426_s0 + $0x58] sm:$0xff]  ;;  %v867_v24 = vld [vmem:[%s1426_s0 + $0x20] sm:$0xff]  ;;  %v868_v28 = vld [vmem:[%s1426_s0 + $0x28] sm:$0xff] }
   0x9   :  { %v882_v22 = vld [vmem:[%s1426_s0 + $0x98] sm:$0xff]  ;;  %v875_v25 = vld [vmem:[%s1426_s0 + $0x60] sm:$0xff]  ;;  %v876_v29 = vld [vmem:[%s1426_s0 + $0x68] sm:$0xff] }
   0xa   :  { %340 = vmatpush.bf16.msra.mxu0 %v900_v2  ;;  %1100 = vmatpush.bf16.msra.mxu1 %v900_v2  ;;  %v890_v23 = vld [vmem:[%s1426_s0 + $0xd8] sm:$0xff]  ;;  %v883_v26 = vld [vmem:[%s1426_s0 + $0xa0] sm:$0xff]  ;;  %v884_v30 = vld [vmem:[%s1426_s0 + $0xa8] sm:$0xff] }
   0xb   :  { %1101 = vmatpush.bf16.msra.mxu2 %v900_v2  ;;  %1102 = vmatpush.bf16.msra.mxu3 %v900_v2  ;;  %v891_v27 = vld [vmem:[%s1426_s0 + $0xe0] sm:$0xff]  ;;  %v892_v31 = vld [vmem:[%s1426_s0 + $0xe8] sm:$0xff]  ;;  %v869_v32 = vld [vmem:[%s1426_s0 + $0x30] sm:$0xff] }
   0xc   :  { %v877_v33 = vld [vmem:[%s1426_s0 + $0x70] sm:$0xff]  ;;  %v870_v36 = vld [vmem:[%s1426_s0 + $0x38] sm:$0xff]  ;;  %v1262_v42 = vld [vmem:[%s1425_s2] ss:$0 sm:$0xff] }
   0xd   :  { %v885_v34 = vld [vmem:[%s1426_s0 + $0xb0] sm:$0xff]  ;;  %v878_v37 = vld [vmem:[%s1426_s0 + $0x78] sm:$0xff] }
   0xe   :  { %341 = vmatpush.bf16.msra.mxu0 %v899_v3  ;;  %1103 = vmatpush.bf16.msra.mxu1 %v899_v3  ;;  %v893_v35 = vld [vmem:[%s1426_s0 + $0xf0] sm:$0xff]  ;;  %v886_v38 = vld [vmem:[%s1426_s0 + $0xb8] sm:$0xff] }
   0xf   :  { %1104 = vmatpush.bf16.msra.mxu2 %v899_v3  ;;  %1105 = vmatpush.bf16.msra.mxu3 %v899_v3  ;;  %v894_v39 = vld [vmem:[%s1426_s0 + $0xf8] sm:$0xff] }
  0x12   :  { %342 = vmatpush.bf16.msra.mxu0 %v898_v4  ;;  %1106 = vmatpush.bf16.msra.mxu1 %v898_v4 }
  0x13   :  { %1107 = vmatpush.bf16.msra.mxu2 %v898_v4  ;;  %1108 = vmatpush.bf16.msra.mxu3 %v898_v4 }
  0x16   :  { %343 = vmatpush.bf16.msra.mxu0 %v897_v5  ;;  %1109 = vmatpush.bf16.msra.mxu1 %v897_v5 }
  0x17   :  { %1110 = vmatpush.bf16.msra.mxu2 %v897_v5  ;;  %1111 = vmatpush.bf16.msra.mxu3 %v897_v5 }
  0x1a   :  { %344 = vmatpush.bf16.msra.mxu0 %v896_v6  ;;  %1112 = vmatpush.bf16.msra.mxu1 %v896_v6 }
  0x1b   :  { %1113 = vmatpush.bf16.msra.mxu2 %v896_v6  ;;  %1114 = vmatpush.bf16.msra.mxu3 %v896_v6 }
  0x1e   :  { %345 = vmatpush.bf16.msra.mxu0 %v895_v7  ;;  %1115 = vmatpush.bf16.msra.mxu1 %v895_v7 }
  0x1f   :  { %1116 = vmatpush.bf16.msra.mxu2 %v895_v7  ;;  %1117 = vmatpush.bf16.msra.mxu3 %v895_v7 }
  0x21   :  { %346 = vmatmul.bf16.vlgmr.msra.gmra.mxu0 %v863_v8  ;;  %386 = vmatmul.bf16.vlgmr.msra.gmra.mxu1 %v871_v9 }
  0x22   :  { %426 = vmatmul.bf16.vlgmr.msra.gmra.mxu2 %v879_v10  ;;  %466 = vmatmul.bf16.vlgmr.msra.gmra.mxu3 %v887_v11 }
  0x31   :  { %351 = vmatmul.bf16.gmra.mxu0 %v864_v12  ;;  %391 = vmatmul.bf16.gmra.mxu1 %v872_v13 }
  0x32   :  { %431 = vmatmul.bf16.gmra.mxu2 %v880_v14  ;;  %471 = vmatmul.bf16.gmra.mxu3 %v888_v15 }
  0x41   :  { %356 = vmatmul.bf16.gmra.mxu0 %v865_v16  ;;  %396 = vmatmul.bf16.gmra.mxu1 %v873_v17 }
  0x42   :  { %436 = vmatmul.bf16.gmra.mxu2 %v881_v18  ;;  %476 = vmatmul.bf16.gmra.mxu3 %v889_v19 }
  0x51   :  { %361 = vmatmul.bf16.gmra.mxu0 %v866_v20  ;;  %401 = vmatmul.bf16.gmra.mxu1 %v874_v21 }
  0x52   :  { %441 = vmatmul.bf16.gmra.mxu2 %v882_v22  ;;  %481 = vmatmul.bf16.gmra.mxu3 %v890_v23 }
  0x61   :  { %366 = vmatmul.bf16.gmra.mxu0 %v867_v24  ;;  %406 = vmatmul.bf16.gmra.mxu1 %v875_v25 }
  0x62   :  { %446 = vmatmul.bf16.gmra.mxu2 %v883_v26  ;;  %486 = vmatmul.bf16.gmra.mxu3 %v891_v27 }
  0x71   :  { %371 = vmatmul.bf16.gmra.mxu0 %v868_v28  ;;  %411 = vmatmul.bf16.gmra.mxu1 %v876_v29 }
  0x72   :  { %451 = vmatmul.bf16.gmra.mxu2 %v884_v30  ;;  %491 = vmatmul.bf16.gmra.mxu3 %v892_v31 }
  0x81   :  { %376 = vmatmul.bf16.gmra.mxu0 %v869_v32  ;;  %416 = vmatmul.bf16.gmra.mxu1 %v877_v33 }
  0x82   :  { %456 = vmatmul.bf16.gmra.mxu2 %v885_v34  ;;  %496 = vmatmul.bf16.gmra.mxu3 %v893_v35 }
  0x91   :  { %381 = vmatmul.bf16.gmra.mxu0 %v870_v36  ;;  %421 = vmatmul.bf16.gmra.mxu1 %v878_v37 }
  0x92   :  { %461 = vmatmul.bf16.gmra.mxu2 %v886_v38  ;;  %501 = vmatmul.bf16.gmra.mxu3 %v894_v39 }
  0x9e   :  { %v347_v40 = vpop.f32.mrf.mxu0  ;;  %v387_v41 = vpop.f32.mrf.mxu1 }
  0x9f   :  { %v348_v43 = vadd.f32 %v1262_v42, %v347_v40  ;;  %v388_v44 = vadd.f32 %v1262_v42, %v387_v41 }
  0xa1   :  { %v507_v51 = vmax.f32 %v348_v43, 0.0  ;;  %v523_v52 = vmax.f32 %v388_v44, 0.0 }
  0xa5   :  { %v427_v45 = vpop.f32.mrf.mxu2  ;;  %v467_v46 = vpop.f32.mrf.mxu3 }
  0xa6   :  { %v349_v47 = vpop.f32.mrf.mxu0  ;;  %v389_v48 = vpop.f32.mrf.mxu1  ;;  %v428_v57 = vadd.f32 %v1262_v42, %v427_v45  ;;  %v468_v58 = vadd.f32 %v1262_v42, %v467_v46 }
  0xa7   :  { %v350_v49 = vadd.f32 %v1262_v42, %v349_v47  ;;  %v390_v50 = vadd.f32 %v1262_v42, %v389_v48 }
  0xa8   :  { %v539_v1 = vmax.f32 %v428_v57, 0.0  ;;  %v555_v2 = vmax.f32 %v468_v58, 0.0 }
  0xa9   :  { %v508_v53 = vmax.f32 %v350_v49, 0.0  ;;  %v524_v54 = vmax.f32 %v390_v50, 0.0 }
  0xab   :  { %v906_v55 = vpack.c.bf16 %v508_v53, %v507_v51  ;;  %v946_v56 = vpack.c.bf16 %v524_v54, %v523_v52 }
  0xad   :  { %907 = vst [vmem:[%s1427_s3] sm:$0xff] %v906_v55   ;;  %v429_v59 = vpop.f32.mrf.mxu2  ;;  %v469_v60 = vpop.f32.mrf.mxu3 }
  0xae   :  { %1070 = vst [vmem:[%s1427_s3 + $0x40] sm:$0xff] %v946_v56   ;;  %v430_v61 = vadd.f32 %v1262_v42, %v429_v59  ;;  %v470_v62 = vadd.f32 %v1262_v42, %v469_v60  ;;  %v352_v63 = vpop.f32.mrf.mxu0  ;;  %v392_v0 = vpop.f32.mrf.mxu1 }
  0xaf   :  { %v353_v7 = vadd.f32 %v1262_v42, %v352_v63  ;;  %v393_v8 = vadd.f32 %v1262_v42, %v392_v0 }
  0xb0   :  { %v540_v3 = vmax.f32 %v430_v61, 0.0  ;;  %v556_v4 = vmax.f32 %v470_v62, 0.0 }
  0xb1   :  { %v509_v15 = vmax.f32 %v353_v7, 0.0  ;;  %v525_v16 = vmax.f32 %v393_v8, 0.0 }
  0xb2   :  { %v986_v5 = vpack.c.bf16 %v540_v3, %v539_v1  ;;  %v1026_v6 = vpack.c.bf16 %v556_v4, %v555_v2 }
  0xb4   :  { %1078 = vst [vmem:[%s1427_s3 + $0x80] sm:$0xff] %v986_v5  }
  0xb5   :  { %1086 = vst [vmem:[%s1427_s3 + $0xc0] sm:$0xff] %v1026_v6   ;;  %v432_v9 = vpop.f32.mrf.mxu2  ;;  %v472_v10 = vpop.f32.mrf.mxu3 }
  0xb6   :  { %v354_v11 = vpop.f32.mrf.mxu0  ;;  %v394_v12 = vpop.f32.mrf.mxu1  ;;  %v433_v21 = vadd.f32 %v1262_v42, %v432_v9  ;;  %v473_v22 = vadd.f32 %v1262_v42, %v472_v10 }
  0xb7   :  { %v355_v13 = vadd.f32 %v1262_v42, %v354_v11  ;;  %v395_v14 = vadd.f32 %v1262_v42, %v394_v12 }
  0xb8   :  { %v541_v29 = vmax.f32 %v433_v21, 0.0  ;;  %v557_v30 = vmax.f32 %v473_v22, 0.0 }
  0xb9   :  { %v510_v17 = vmax.f32 %v355_v13, 0.0  ;;  %v526_v18 = vmax.f32 %v395_v14, 0.0 }
  0xbb   :  { %v911_v19 = vpack.c.bf16 %v510_v17, %v509_v15  ;;  %v951_v20 = vpack.c.bf16 %v526_v18, %v525_v16 }
  0xbd   :  { %1063 = vst [vmem:[%s1427_s3 + $0x8] sm:$0xff] %v911_v19   ;;  %v434_v23 = vpop.f32.mrf.mxu2  ;;  %v474_v24 = vpop.f32.mrf.mxu3 }
  0xbe   :  { %1071 = vst [vmem:[%s1427_s3 + $0x48] sm:$0xff] %v951_v20   ;;  %v435_v25 = vadd.f32 %v1262_v42, %v434_v23  ;;  %v475_v26 = vadd.f32 %v1262_v42, %v474_v24  ;;  %v357_v27 = vpop.f32.mrf.mxu0  ;;  %v397_v28 = vpop.f32.mrf.mxu1 }
  0xbf   :  { %v358_v35 = vadd.f32 %v1262_v42, %v357_v27  ;;  %v398_v36 = vadd.f32 %v1262_v42, %v397_v28 }
  0xc0   :  { %v542_v31 = vmax.f32 %v435_v25, 0.0  ;;  %v558_v32 = vmax.f32 %v475_v26, 0.0 }
  0xc1   :  { %v511_v44 = vmax.f32 %v358_v35, 0.0  ;;  %v527_v45 = vmax.f32 %v398_v36, 0.0 }
  0xc2   :  { %v991_v33 = vpack.c.bf16 %v542_v31, %v541_v29  ;;  %v1031_v34 = vpack.c.bf16 %v558_v32, %v557_v30 }
  0xc4   :  { %1079 = vst [vmem:[%s1427_s3 + $0x88] sm:$0xff] %v991_v33  }
  0xc5   :  { %1087 = vst [vmem:[%s1427_s3 + $0xc8] sm:$0xff] %v1031_v34   ;;  %v437_v37 = vpop.f32.mrf.mxu2  ;;  %v477_v38 = vpop.f32.mrf.mxu3 }
  0xc6   :  { %v359_v39 = vpop.f32.mrf.mxu0  ;;  %v399_v40 = vpop.f32.mrf.mxu1  ;;  %v438_v50 = vadd.f32 %v1262_v42, %v437_v37  ;;  %v478_v51 = vadd.f32 %v1262_v42, %v477_v38 }
  0xc7   :  { %v360_v41 = vadd.f32 %v1262_v42, %v359_v39  ;;  %v400_v43 = vadd.f32 %v1262_v42, %v399_v40 }
  0xc8   :  { %v543_v58 = vmax.f32 %v438_v50, 0.0  ;;  %v559_v59 = vmax.f32 %v478_v51, 0.0 }
  0xc9   :  { %v512_v46 = vmax.f32 %v360_v41, 0.0  ;;  %v528_v47 = vmax.f32 %v400_v43, 0.0 }
  0xcb   :  { %v916_v48 = vpack.c.bf16 %v512_v46, %v511_v44  ;;  %v956_v49 = vpack.c.bf16 %v528_v47, %v527_v45 }
  0xcd   :  { %1064 = vst [vmem:[%s1427_s3 + $0x10] sm:$0xff] %v916_v48   ;;  %v439_v52 = vpop.f32.mrf.mxu2  ;;  %v479_v53 = vpop.f32.mrf.mxu3 }
  0xce   :  { %1072 = vst [vmem:[%s1427_s3 + $0x50] sm:$0xff] %v956_v49   ;;  %v440_v54 = vadd.f32 %v1262_v42, %v439_v52  ;;  %v480_v55 = vadd.f32 %v1262_v42, %v479_v53  ;;  %v362_v56 = vpop.f32.mrf.mxu0  ;;  %v402_v57 = vpop.f32.mrf.mxu1 }
  0xcf   :  { %v363_v0 = vadd.f32 %v1262_v42, %v362_v56  ;;  %v403_v1 = vadd.f32 %v1262_v42, %v402_v57 }
  0xd0   :  { %v544_v60 = vmax.f32 %v440_v54, 0.0  ;;  %v560_v61 = vmax.f32 %v480_v55, 0.0 }
  0xd1   :  { %v513_v8 = vmax.f32 %v363_v0, 0.0  ;;  %v529_v9 = vmax.f32 %v403_v1, 0.0 }
  0xd2   :  { %v996_v62 = vpack.c.bf16 %v544_v60, %v543_v58  ;;  %v1036_v63 = vpack.c.bf16 %v560_v61, %v559_v59 }
  0xd4   :  { %1080 = vst [vmem:[%s1427_s3 + $0x90] sm:$0xff] %v996_v62  }
  0xd5   :  { %1088 = vst [vmem:[%s1427_s3 + $0xd0] sm:$0xff] %v1036_v63   ;;  %v442_v2 = vpop.f32.mrf.mxu2  ;;  %v482_v3 = vpop.f32.mrf.mxu3 }
  0xd6   :  { %v364_v4 = vpop.f32.mrf.mxu0  ;;  %v404_v5 = vpop.f32.mrf.mxu1  ;;  %v443_v14 = vadd.f32 %v1262_v42, %v442_v2  ;;  %v483_v15 = vadd.f32 %v1262_v42, %v482_v3 }
  0xd7   :  { %v365_v6 = vadd.f32 %v1262_v42, %v364_v4  ;;  %v405_v7 = vadd.f32 %v1262_v42, %v404_v5 }
  0xd8   :  { %v545_v22 = vmax.f32 %v443_v14, 0.0  ;;  %v561_v23 = vmax.f32 %v483_v15, 0.0 }
  0xd9   :  { %v514_v10 = vmax.f32 %v365_v6, 0.0  ;;  %v530_v11 = vmax.f32 %v405_v7, 0.0 }
  0xdb   :  { %v921_v12 = vpack.c.bf16 %v514_v10, %v513_v8  ;;  %v961_v13 = vpack.c.bf16 %v530_v11, %v529_v9 }
  0xdd   :  { %1065 = vst [vmem:[%s1427_s3 + $0x18] sm:$0xff] %v921_v12   ;;  %v444_v16 = vpop.f32.mrf.mxu2  ;;  %v484_v17 = vpop.f32.mrf.mxu3 }
  0xde   :  { %1073 = vst [vmem:[%s1427_s3 + $0x58] sm:$0xff] %v961_v13   ;;  %v445_v18 = vadd.f32 %v1262_v42, %v444_v16  ;;  %v485_v19 = vadd.f32 %v1262_v42, %v484_v17  ;;  %v367_v20 = vpop.f32.mrf.mxu0  ;;  %v407_v21 = vpop.f32.mrf.mxu1 }
  0xdf   :  { %v368_v28 = vadd.f32 %v1262_v42, %v367_v20  ;;  %v408_v29 = vadd.f32 %v1262_v42, %v407_v21 }
  0xe0   :  { %v546_v24 = vmax.f32 %v445_v18, 0.0  ;;  %v562_v25 = vmax.f32 %v485_v19, 0.0 }
  0xe1   :  { %v515_v36 = vmax.f32 %v368_v28, 0.0  ;;  %v531_v37 = vmax.f32 %v408_v29, 0.0 }
  0xe2   :  { %v1001_v26 = vpack.c.bf16 %v546_v24, %v545_v22  ;;  %v1041_v27 = vpack.c.bf16 %v562_v25, %v561_v23 }
  0xe4   :  { %1081 = vst [vmem:[%s1427_s3 + $0x98] sm:$0xff] %v1001_v26  }
  0xe5   :  { %1089 = vst [vmem:[%s1427_s3 + $0xd8] sm:$0xff] %v1041_v27   ;;  %v447_v30 = vpop.f32.mrf.mxu2  ;;  %v487_v31 = vpop.f32.mrf.mxu3 }
  0xe6   :  { %v369_v32 = vpop.f32.mrf.mxu0  ;;  %v409_v33 = vpop.f32.mrf.mxu1  ;;  %v448_v43 = vadd.f32 %v1262_v42, %v447_v30  ;;  %v488_v44 = vadd.f32 %v1262_v42, %v487_v31 }
  0xe7   :  { %v370_v34 = vadd.f32 %v1262_v42, %v369_v32  ;;  %v410_v35 = vadd.f32 %v1262_v42, %v409_v33 }
  0xe8   :  { %v547_v51 = vmax.f32 %v448_v43, 0.0  ;;  %v563_v52 = vmax.f32 %v488_v44, 0.0 }
  0xe9   :  { %v516_v38 = vmax.f32 %v370_v34, 0.0  ;;  %v532_v39 = vmax.f32 %v410_v35, 0.0 }
  0xeb   :  { %v926_v40 = vpack.c.bf16 %v516_v38, %v515_v36  ;;  %v966_v41 = vpack.c.bf16 %v532_v39, %v531_v37 }
  0xed   :  { %1066 = vst [vmem:[%s1427_s3 + $0x20] sm:$0xff] %v926_v40   ;;  %v449_v45 = vpop.f32.mrf.mxu2  ;;  %v489_v46 = vpop.f32.mrf.mxu3 }
  0xee   :  { %1074 = vst [vmem:[%s1427_s3 + $0x60] sm:$0xff] %v966_v41   ;;  %v450_v47 = vadd.f32 %v1262_v42, %v449_v45  ;;  %v490_v48 = vadd.f32 %v1262_v42, %v489_v46  ;;  %v372_v49 = vpop.f32.mrf.mxu0  ;;  %v412_v50 = vpop.f32.mrf.mxu1 }
  0xef   :  { %v373_v57 = vadd.f32 %v1262_v42, %v372_v49  ;;  %v413_v58 = vadd.f32 %v1262_v42, %v412_v50 }
  0xf0   :  { %v548_v53 = vmax.f32 %v450_v47, 0.0  ;;  %v564_v54 = vmax.f32 %v490_v48, 0.0 }
  0xf1   :  { %v517_v1 = vmax.f32 %v373_v57, 0.0  ;;  %v533_v2 = vmax.f32 %v413_v58, 0.0 }
  0xf2   :  { %v1006_v55 = vpack.c.bf16 %v548_v53, %v547_v51  ;;  %v1046_v56 = vpack.c.bf16 %v564_v54, %v563_v52 }
  0xf4   :  { %1082 = vst [vmem:[%s1427_s3 + $0xa0] sm:$0xff] %v1006_v55  }
  0xf5   :  { %1090 = vst [vmem:[%s1427_s3 + $0xe0] sm:$0xff] %v1046_v56   ;;  %v452_v59 = vpop.f32.mrf.mxu2  ;;  %v492_v60 = vpop.f32.mrf.mxu3 }
  0xf6   :  { %v374_v61 = vpop.f32.mrf.mxu0  ;;  %v414_v62 = vpop.f32.mrf.mxu1  ;;  %v453_v7 = vadd.f32 %v1262_v42, %v452_v59  ;;  %v493_v8 = vadd.f32 %v1262_v42, %v492_v60 }
  0xf7   :  { %v375_v63 = vadd.f32 %v1262_v42, %v374_v61  ;;  %v415_v0 = vadd.f32 %v1262_v42, %v414_v62 }
  0xf8   :  { %v549_v15 = vmax.f32 %v453_v7, 0.0  ;;  %v565_v16 = vmax.f32 %v493_v8, 0.0 }
  0xf9   :  { %v518_v3 = vmax.f32 %v375_v63, 0.0  ;;  %v534_v4 = vmax.f32 %v415_v0, 0.0 }
  0xfb   :  { %v931_v5 = vpack.c.bf16 %v518_v3, %v517_v1  ;;  %v971_v6 = vpack.c.bf16 %v534_v4, %v533_v2 }
  0xfd   :  { %1067 = vst [vmem:[%s1427_s3 + $0x28] sm:$0xff] %v931_v5   ;;  %v454_v9 = vpop.f32.mrf.mxu2  ;;  %v494_v10 = vpop.f32.mrf.mxu3 }
  0xfe   :  { %1075 = vst [vmem:[%s1427_s3 + $0x68] sm:$0xff] %v971_v6   ;;  %v455_v11 = vadd.f32 %v1262_v42, %v454_v9  ;;  %v495_v12 = vadd.f32 %v1262_v42, %v494_v10  ;;  %v377_v13 = vpop.f32.mrf.mxu0  ;;  %v417_v14 = vpop.f32.mrf.mxu1 }
  0xff   :  { %v378_v21 = vadd.f32 %v1262_v42, %v377_v13  ;;  %v418_v22 = vadd.f32 %v1262_v42, %v417_v14 }
 0x100   :  { %v550_v17 = vmax.f32 %v455_v11, 0.0  ;;  %v566_v18 = vmax.f32 %v495_v12, 0.0 }
 0x101   :  { %v519_v29 = vmax.f32 %v378_v21, 0.0  ;;  %v535_v30 = vmax.f32 %v418_v22, 0.0 }
 0x102   :  { %v1011_v19 = vpack.c.bf16 %v550_v17, %v549_v15  ;;  %v1051_v20 = vpack.c.bf16 %v566_v18, %v565_v16 }
 0x104   :  { %1083 = vst [vmem:[%s1427_s3 + $0xa8] sm:$0xff] %v1011_v19  }
 0x105   :  { %1091 = vst [vmem:[%s1427_s3 + $0xe8] sm:$0xff] %v1051_v20   ;;  %v457_v23 = vpop.f32.mrf.mxu2  ;;  %v497_v24 = vpop.f32.mrf.mxu3 }
 0x106   :  { %v379_v25 = vpop.f32.mrf.mxu0  ;;  %v419_v26 = vpop.f32.mrf.mxu1  ;;  %v458_v35 = vadd.f32 %v1262_v42, %v457_v23  ;;  %v498_v36 = vadd.f32 %v1262_v42, %v497_v24 }
 0x107   :  { %v380_v27 = vadd.f32 %v1262_v42, %v379_v25  ;;  %v420_v28 = vadd.f32 %v1262_v42, %v419_v26 }
 0x108   :  { %v551_v44 = vmax.f32 %v458_v35, 0.0  ;;  %v567_v45 = vmax.f32 %v498_v36, 0.0 }
 0x109   :  { %v520_v31 = vmax.f32 %v380_v27, 0.0  ;;  %v536_v32 = vmax.f32 %v420_v28, 0.0 }
 0x10b   :  { %v936_v33 = vpack.c.bf16 %v520_v31, %v519_v29  ;;  %v976_v34 = vpack.c.bf16 %v536_v32, %v535_v30 }
 0x10d   :  { %1068 = vst [vmem:[%s1427_s3 + $0x30] sm:$0xff] %v936_v33   ;;  %v459_v37 = vpop.f32.mrf.mxu2  ;;  %v499_v38 = vpop.f32.mrf.mxu3 }
 0x10e   :  { %1076 = vst [vmem:[%s1427_s3 + $0x70] sm:$0xff] %v976_v34   ;;  %v460_v39 = vadd.f32 %v1262_v42, %v459_v37  ;;  %v500_v40 = vadd.f32 %v1262_v42, %v499_v38  ;;  %v382_v41 = vpop.f32.mrf.mxu0  ;;  %v422_v43 = vpop.f32.mrf.mxu1 }
 0x10f   :  { %v383_v50 = vadd.f32 %v1262_v42, %v382_v41  ;;  %v423_v51 = vadd.f32 %v1262_v42, %v422_v43 }
 0x110   :  { %v552_v46 = vmax.f32 %v460_v39, 0.0  ;;  %v568_v47 = vmax.f32 %v500_v40, 0.0 }
 0x111   :  { %v521_v58 = vmax.f32 %v383_v50, 0.0  ;;  %v537_v59 = vmax.f32 %v423_v51, 0.0 }
 0x112   :  { %v1016_v48 = vpack.c.bf16 %v552_v46, %v551_v44  ;;  %v1056_v49 = vpack.c.bf16 %v568_v47, %v567_v45 }
 0x114   :  { %1084 = vst [vmem:[%s1427_s3 + $0xb0] sm:$0xff] %v1016_v48  }
 0x115   :  { %1092 = vst [vmem:[%s1427_s3 + $0xf0] sm:$0xff] %v1056_v49   ;;  %v462_v52 = vpop.f32.mrf.mxu2  ;;  %v502_v53 = vpop.f32.mrf.mxu3 }
 0x116   :  { %v384_v54 = vpop.f32.mrf.mxu0  ;;  %v424_v55 = vpop.f32.mrf.mxu1  ;;  %v463_v0 = vadd.f32 %v1262_v42, %v462_v52  ;;  %v503_v1 = vadd.f32 %v1262_v42, %v502_v53 }
 0x117   :  { %v385_v56 = vadd.f32 %v1262_v42, %v384_v54  ;;  %v425_v57 = vadd.f32 %v1262_v42, %v424_v55 }
 0x118   :  { %v553_v6 = vmax.f32 %v463_v0, 0.0  ;;  %v569_v7 = vmax.f32 %v503_v1, 0.0 }
 0x119   :  { %v522_v60 = vmax.f32 %v385_v56, 0.0  ;;  %v538_v61 = vmax.f32 %v425_v57, 0.0 }
 0x11b   :  { %v941_v62 = vpack.c.bf16 %v522_v60, %v521_v58  ;;  %v981_v63 = vpack.c.bf16 %v538_v61, %v537_v59 }
 0x11d   :  { %1069 = vst [vmem:[%s1427_s3 + $0x38] sm:$0xff] %v941_v62   ;;  %v464_v2 = vpop.f32.mrf.mxu2  ;;  %v504_v3 = vpop.f32.mrf.mxu3 }
 0x11e   :  { %1077 = vst [vmem:[%s1427_s3 + $0x78] sm:$0xff] %v981_v63   ;;  %v465_v4 = vadd.f32 %v1262_v42, %v464_v2  ;;  %v505_v5 = vadd.f32 %v1262_v42, %v504_v3 }
 0x120   :  { %v554_v8 = vmax.f32 %v465_v4, 0.0  ;;  %v570_v9 = vmax.f32 %v505_v5, 0.0 }
 0x122   :  { %v1021_v10 = vpack.c.bf16 %v554_v8, %v553_v6  ;;  %v1061_v11 = vpack.c.bf16 %v570_v9, %v569_v7 }
 0x124   :  { %1085 = vst [vmem:[%s1427_s3 + $0xb8] sm:$0xff] %v1021_v10  }
 0x125   :  { %1093 = vst [vmem:[%s1427_s3 + $0xf8] sm:$0xff] %v1061_v11  }

// kernel: fwd.4
= control target key start
LH: loop header
LB: loop body
LE: loop exit
PB: predicated region body
PF: predicated region fallthrough
CT: control target
= control target key end

     0   :  { %s2688_s12 = smov 0   ;;  %s2690_s13 = smov 0   ;;  %s3144_s0 = inlined_call_operand.vmem [shape: bf16[8,9,16,128], index: 0, kind: input, shape index: {}]   ;;  %s3145_s1 = inlined_call_operand.vmem [shape: bf16[9,128,128], index: 1, kind: input, shape index: {}]   ;;  %s3146_s2 = inlined_call_operand.vmem [shape: f32[1,128], index: 2, kind: input, shape index: {}]   ;;  %s3147_s3 = inlined_call_operand.vmem [shape: bf16[2,8,8,128], index: 3, kind: output, shape index: {}]  }
   0x1   :  { %s2692_s14 = smov 0  }
   0x2 LB: > { %s25_s15 = sadd.s32 1, %s2662_s13  ;;  %p1891_p0 = scmp.ge.s32.totalorder %s2666_s14, 1  ;;  %s2666_s14 = sphi %s2692_s14, %s13_s14   ;;  %s2662_s13 = sphi %s2690_s13, %s3151_s13   ;;  %s2658_s12 = sphi %s2688_s12, %s3150_s12  }
   0x3   : > { %p27_p1 = scmp.ge.s32.totalorder %s25_s15, 2  ;;  %p153_p2 = scmp.lt.s32.totalorder %s2666_s14, 3 }
   0x5   : > { %s3153_s15 = smov (%p27_p1, %s25_s15), 0  ;;  %p154_p3 = pnand %p1891_p0, %p153_p2 }
   0x6   : > { %s1892_s18 = sshll.u32 (!%p154_p3), %s2658_s12, 2  ;;  %p190_p5 = scmp.lt.s32.totalorder (!%p154_p3), %s2658_s12, 1 }
   0x7   : > { %157 = sbr.rel (%p154_p3) target bundleno = 337 (0x151), region = 32  ;;  %p183_p4 = scmp.lt.s32.totalorder (!%p154_p3), %s1892_s18, 7 }
   0xc   : > { %v2506_v0 = vld [vmem:[%s3145_s1 + $0x78] sm:$0xff]  ;;  %v2505_v2 = vld [vmem:[%s3145_s1 + $0x70] sm:$0xff]  ;;  %s3155_s18 = smov (!%p183_p4, %s1892_s18), 7  ;;  %v2504_v6 = vld [vmem:[%s3145_s1 + $0x68] sm:$0xff]  ;;  %vm473_vm0 = vsmask.f32 3328 }
   0xd   : > { %v2514_v1 = vld [vmem:[%s3145_s1 + $0xb8] sm:$0xff]  ;;  %2602 = vmatpush.bf16.msra.mxu1 %v2506_v0  ;;  %327 = vmatpush.bf16.msra.mxu0 %v2506_v0  ;;  %v2513_v3 = vld [vmem:[%s3145_s1 + $0xb0] sm:$0xff]  ;;  %s2618_s29 = smul.u32 72, %s3155_s18  ;;  %v2512_v7 = vld [vmem:[%s3145_s1 + $0xa8] sm:$0xff]  ;;  %vm474_vm1 = vsmask.f32 7440 }
   0xe   : > { %669 = vmatpush.bf16.msra.mxu2 %v2514_v1  ;;  %v2526_v4 = vld [vmem:[%s3145_s1 + $0xf8] sm:$0xff]  ;;  %v2525_v5 = vld [vmem:[%s3145_s1 + $0xf0] sm:$0xff]  ;;  %v2524_v8 = vld [vmem:[%s3145_s1 + $0xe8] sm:$0xff]  ;;  %s3157_s12 = smov (!%p190_p5, %s2658_s12), 1 }
   0xf   : > { %806 = vmatpush.bf16.msra.mxu3 %v2526_v4  ;;  %s2736_s9 = scalar_lea.vmem %s3144_s0, %s2618_s29  ;;  %v2503_v10 = vld [vmem:[%s3145_s1 + $0x60] sm:$0xff]  ;;  %v2502_v23 = vld [vmem:[%s3145_s1 + $0x58] sm:$0xff]  ;;  %v2501_v31 = vld [vmem:[%s3145_s1 + $0x50] sm:$0xff]  ;;  %s2482_s6 = sshll.u32 %s3157_s12, 5 }
  0x10   : > { %v457_v9 = vld [vmem:[%s2736_s9] sm:$0xf]  ;;  %v459_v11 = vld [vmem:[%s2736_s9 + $0x8] sm:$0xf]  ;;  %v458_v16 = vld [vmem:[%s2736_s9 + $0x4] sm:$0x1]  ;;  %s3114_s10 = scalar_lea.vmem %s3147_s3, %s2482_s6 }
  0x11   : > { %2603 = vmatpush.bf16.msra.mxu1 %v2505_v2  ;;  %328 = vmatpush.bf16.msra.mxu0 %v2505_v2  ;;  %v2511_v12 = vld [vmem:[%s3145_s1 + $0xa0] sm:$0xff]  ;;  %v477_v13 = vshrl.u32 %v457_v9, 16  ;;  %v480_v14 = vshll.u32 %v457_v9, 16  ;;  %v491_v15 = vshrl.u32 %v459_v11, 16  ;;  %v460_v17 = vld [vmem:[%s2736_s9 + $0xc] sm:$0x1]  ;;  %vm2770_vm2 = vmor %vm473_vm0, %vm474_vm1 }
  0x12   : > { %670 = vmatpush.bf16.msra.mxu2 %v2513_v3  ;;  %v494_v18 = vshll.u32 %v459_v11, 16  ;;  %v2523_v19 = vld [vmem:[%s3145_s1 + $0xe0] sm:$0xff]  ;;  %v2510_v25 = vld [vmem:[%s3145_s1 + $0x98] sm:$0xff]  ;;  %v486_v27 = vshll.u32 %v458_v16, 16  ;;  %v500_v28 = vshll.u32 %v460_v17, 16  ;;  %v2509_v32 = vld [vmem:[%s3145_s1 + $0x90] sm:$0xff] }
  0x13   : > { %807 = vmatpush.bf16.msra.mxu3 %v2525_v5  ;;  %v479_v20 = vrot.slane %v477_v13, 4  ;;  %v482_v21 = vrot.slane %v480_v14, 5  ;;  %v493_v22 = vrot.slane %v491_v15, 4  ;;  %v2522_v30 = vld [vmem:[%s3145_s1 + $0xd8] sm:$0xff]  ;;  %v461_v37 = vld [vmem:[%s2736_s9 + $0x10] sm:$0xf] }
  0x14   : > { %v496_v24 = vrot.slane %v494_v18, 5  ;;  %v488_v34 = vrot.slane %v486_v27, 5  ;;  %v502_v36 = vrot.slane %v500_v28, 5  ;;  %v463_v39 = vld [vmem:[%s2736_s9 + $0x18] sm:$0xf]  ;;  %v2521_v40 = vld [vmem:[%s3145_s1 + $0xd0] sm:$0xff] }
  0x15   : > { %2604 = vmatpush.bf16.msra.mxu1 %v2504_v6  ;;  %329 = vmatpush.bf16.msra.mxu0 %v2504_v6  ;;  %v483_v26 = vor.u32 %v482_v21, %v479_v20  ;;  %v2500_v41 = vld [vmem:[%s3145_s1 + $0x48] sm:$0xff]  ;;  %v505_v42 = vshrl.u32 %v461_v37, 16  ;;  %v508_v43 = vshll.u32 %v461_v37, 16  ;;  %v519_v47 = vshrl.u32 %v463_v39, 16  ;;  %v2499_v49 = vld [vmem:[%s3145_s1 + $0x40] sm:$0xff]  ;;  %v2494_v51 = vld [vmem:[%s3145_s1 + $0x38] sm:$0xff] }
  0x16   : > { %671 = vmatpush.bf16.msra.mxu2 %v2512_v7  ;;  %v497_v29 = vor.u32 %v496_v24, %v493_v22  ;;  %v2508_v44 = vld [vmem:[%s3145_s1 + $0x88] sm:$0xff]  ;;  %v522_v48 = vshll.u32 %v463_v39, 16  ;;  %v2507_v52 = vld [vmem:[%s3145_s1 + $0x80] sm:$0xff]  ;;  %v2497_v54 = vld [vmem:[%s2736_s9 + $0x6c] sm:$0xf0] }
  0x17   : > { %808 = vmatpush.bf16.msra.mxu3 %v2524_v8  ;;  %v484_v33 = vrot.slane %v483_v26, 4  ;;  %v1930_v50 = vld [vmem:[%s2736_s9 + $0x68] sm:$0xf]  ;;  %v2495_v56 = vld [vmem:[%s2736_s9 + $0x4c] sm:$0xf0]  ;;  %v507_v60 = vrot.slane %v505_v42, 4 }
  0x18   : > { %v498_v35 = vrot.slane %v497_v29, 4  ;;  %v2520_v53 = vld [vmem:[%s3145_s1 + $0xc8] sm:$0xff]  ;;  %v462_v59 = vld [vmem:[%s2736_s9 + $0x14] sm:$0x1]  ;;  %v510_v61 = vrot.slane %v508_v43, 5  ;;  %v521_v62 = vrot.slane %v519_v47, 4  ;;  %v1931_v3 = vor.u32 %v2497_v54, %v1930_v50 }
  0x19   : > { %2605 = vmatpush.bf16.msra.mxu1 %v2503_v10  ;;  %330 = vmatpush.bf16.msra.mxu0 %v2503_v10  ;;  %v489_v45 = vsel %vm2770_vm2, %v484_v33, %v488_v34  ;;  %v1922_v55 = vld [vmem:[%s2736_s9 + $0x48] sm:$0xf]  ;;  %v524_v63 = vrot.slane %v522_v48, 5  ;;  %v2538_v0 = vld [vmem:[%s3145_s1 + $0x138] sm:$0xff]  ;;  %v2519_v6 = vld [vmem:[%s3145_s1 + $0xc0] sm:$0xff]  ;;  %v514_v9 = vshll.u32 %v462_v59, 16 }
  0x1a   : > { %672 = vmatpush.bf16.msra.mxu2 %v2511_v12  ;;  %v503_v46 = vsel %vm2770_vm2, %v498_v35, %v502_v36  ;;  %v605_v57 = vunpack.c.l.b16 %v489_v45  ;;  %v2558_v1 = vld [vmem:[%s3145_s1 + $0x1b8] sm:$0xff]  ;;  %v1923_v4 = vor.u32 %v2495_v56, %v1922_v55  ;;  %v2090_v7 = vld [vmem:[%s2736_s9 + $0x90] sm:$0xf]  ;;  %v511_v11 = vor.u32 %v510_v61, %v507_v60  ;;  %v2492_v18 = vld [vmem:[%s3145_s1 + $0x28] sm:$0xff] }
  0x1b   : > { %809 = vmatpush.bf16.msra.mxu3 %v2523_v19  ;;  %v606_v58 = vunpack.c.l.b16 %v503_v46  ;;  %v464_v2 = vld [vmem:[%s2736_s9 + $0x1c] sm:$0x1]  ;;  %v2515_v8 = vld [vmem:[%s2736_s9 + $0x94] sm:$0xf0]  ;;  %v2493_v10 = vld [vmem:[%s3145_s1 + $0x30] sm:$0xff]  ;;  %v525_v12 = vor.u32 %v524_v63, %v521_v62  ;;  %v516_v19 = vrot.slane %v514_v9, 5 }
  0x1c   : > { %v528_v13 = vshll.u32 %v464_v2, 16  ;;  %v2570_v14 = vld [vmem:[%s3145_s1 + $0x1f8] sm:$0xff]  ;;  %v2537_v15 = vld [vmem:[%s3145_s1 + $0x130] sm:$0xff]  ;;  %v2091_v17 = vor.u32 %v2515_v8, %v2090_v7  ;;  %v512_v20 = vrot.slane %v511_v11, 4  ;;  %v465_v24 = vld [vmem:[%s2736_s9 + $0x20] sm:$0xf] }
  0x1d   : > { %2606 = vmatpush.bf16.msra.mxu1 %v2502_v23  ;;  %331 = vmatpush.bf16.msra.mxu0 %v2502_v23  ;;  %v613_v5 = vpack.c.b16 %v606_v58, %v605_v57  ;;  %v2557_v16 = vld [vmem:[%s3145_s1 + $0x1b0] sm:$0xff]  ;;  %v526_v21 = vrot.slane %v525_v12, 4  ;;  %v2556_v26 = vld [vmem:[%s3145_s1 + $0x1a8] sm:$0xff]  ;;  %v533_v28 = vshrl.u32 %v465_v24, 16  ;;  %v536_v29 = vshll.u32 %v465_v24, 16  ;;  %v2535_v36 = vld [vmem:[%s3145_s1 + $0x120] sm:$0xff] }
  0x1e   : > { %673 = vmatpush.bf16.msra.mxu2 %v2510_v25  ;;  %v530_v22 = vrot.slane %v528_v13, 5  ;;  %v2569_v23 = vld [vmem:[%s3145_s1 + $0x1f0] sm:$0xff]  ;;  %v2536_v25 = vld [vmem:[%s3145_s1 + $0x128] sm:$0xff]  ;;  %v2555_v37 = vld [vmem:[%s3145_s1 + $0x1a0] sm:$0xff] }
  0x1f   : > { %810 = vmatpush.bf16.msra.mxu3 %v2522_v30  ;;  %v467_v27 = vld [vmem:[%s2736_s9 + $0x28] sm:$0xf]  ;;  %v2491_v30 = vld [vmem:[%s3145_s1 + $0x20] sm:$0xff]  ;;  %v1934_v39 = vld [vmem:[%s2736_s9 + $0x78] sm:$0xf]  ;;  %v535_v45 = vrot.slane %v533_v28, 4 }
  0x20   : > { %v547_v33 = vshrl.u32 %v467_v27, 16  ;;  %v550_v34 = vshll.u32 %v467_v27, 16  ;;  %v2568_v35 = vld [vmem:[%s3145_s1 + $0x1e8] sm:$0xff]  ;;  %v2496_v42 = vld [vmem:[%s2736_s9 + $0x5c] sm:$0xf0]  ;;  %v538_v46 = vrot.slane %v536_v29, 5 }
  0x21   : > { %2607 = vmatpush.bf16.msra.mxu1 %v2501_v31  ;;  %332 = vmatpush.bf16.msra.mxu0 %v2501_v31  ;;  %v517_v31 = vsel %vm2770_vm2, %v512_v20, %v516_v19  ;;  %v2490_v47 = vld [vmem:[%s3145_s1 + $0x18] sm:$0xff]  ;;  %v2094_v56 = vld [vmem:[%s2736_s9 + $0xa0] sm:$0xf]  ;;  %v2516_v57 = vld [vmem:[%s2736_s9 + $0xa4] sm:$0xf0] }
  0x22   : > { %674 = vmatpush.bf16.msra.mxu2 %v2509_v32  ;;  %v531_v32 = vsel %vm2770_vm2, %v526_v21, %v530_v22  ;;  %v607_v43 = vunpack.c.l.b16 %v517_v31  ;;  %v549_v48 = vrot.slane %v547_v33, 4  ;;  %v2534_v50 = vld [vmem:[%s3145_s1 + $0x118] sm:$0xff]  ;;  %v539_v58 = vor.u32 %v538_v46, %v535_v45  ;;  %v2489_v59 = vld [vmem:[%s3145_s1 + $0x10] sm:$0xff]  ;;  %v2488_v2 = vld [vmem:[%s3145_s1 + $0x8] sm:$0xff] }
  0x23   : > { %811 = vmatpush.bf16.msra.mxu3 %v2521_v40  ;;  %v2498_v40 = vld [vmem:[%s2736_s9 + $0x7c] sm:$0xf0]  ;;  %v2533_v63 = vld [vmem:[%s3145_s1 + $0x110] sm:$0xff]  ;;  %v2532_v9 = vld [vmem:[%s3145_s1 + $0x108] sm:$0xff] }
  0x24   : > { %v2567_v7 = vld [vmem:[%s3145_s1 + $0x1e0] sm:$0xff]  ;;  %v469_v8 = vld [vmem:[%s2736_s9 + $0x30] sm:$0xf]  ;;  %v2546_v20 = vld [vmem:[%s3145_s1 + $0x178] sm:$0xff] }
  0x25   : > { %2608 = vmatpush.bf16.msra.mxu1 %v2500_v41  ;;  %333 = vmatpush.bf16.msra.mxu0 %v2500_v41  ;;  %v1926_v41 = vld [vmem:[%s2736_s9 + $0x58] sm:$0xf]  ;;  %v2553_v11 = vld [vmem:[%s3145_s1 + $0x190] sm:$0xff]  ;;  %v561_v12 = vshrl.u32 %v469_v8, 16  ;;  %v564_v13 = vshll.u32 %v469_v8, 16  ;;  %v2531_v21 = vld [vmem:[%s3145_s1 + $0x100] sm:$0xff] }
  0x26   : > { %675 = vmatpush.bf16.msra.mxu2 %v2508_v44  ;;  %v608_v44 = vunpack.c.l.b16 %v531_v32  ;;  %v1927_v54 = vor.u32 %v2496_v42, %v1926_v41  ;;  %v1970_v22 = vld [vmem:[%s2736_s9] sm:$0xf]  ;;  %v2578_v24 = vld [vmem:[%s3145_s1 + $0x238] sm:$0xff]  ;;  %v2545_v33 = vld [vmem:[%s3145_s1 + $0x170] sm:$0xff] }
  0x27   : > { %812 = vmatpush.bf16.msra.mxu3 %v2520_v53  ;;  %v1935_v53 = vor.u32 %v2498_v40, %v1934_v39  ;;  %v563_v29 = vrot.slane %v561_v12, 4  ;;  %v2098_v40 = vld [vmem:[%s2736_s9 + $0xb0] sm:$0xf]  ;;  %v2517_v41 = vld [vmem:[%s2736_s9 + $0xb4] sm:$0xf0]  ;;  %v2540_v12 = vld [vmem:[%s3145_s1 + $0x148] sm:$0xff] }
  0x28   : > { %v614_v55 = vpack.c.b16 %v608_v44, %v607_v43  ;;  %v2577_v43 = vld [vmem:[%s3145_s1 + $0x230] sm:$0xff] }
  0x29   : > { %2609 = vmatpush.bf16.msra.mxu1 %v2499_v49  ;;  %334 = vmatpush.bf16.msra.mxu0 %v2499_v49  ;;  %v552_v49 = vrot.slane %v550_v34, 5  ;;  %v470_v34 = vld [vmem:[%s2736_s9 + $0x34] sm:$0x1] }
  0x2a   : > { %676 = vmatpush.bf16.msra.mxu2 %v2507_v52  ;;  %v468_v52 = vld [vmem:[%s2736_s9 + $0x2c] sm:$0x1]  ;;  %v570_v44 = vshll.u32 %v470_v34, 16  ;;  %v2418_v34 = vld [vmem:[%s2736_s9 + $0x10] sm:$0xf] }
  0x2b   : > { %813 = vmatpush.bf16.msra.mxu3 %v2519_v6  ;;  %v553_v61 = vor.u32 %v552_v49, %v549_v48  ;;  %v556_v62 = vshll.u32 %v468_v52, 16  ;;  %v2552_v48 = vld [vmem:[%s3145_s1 + $0x188] sm:$0xff]  ;;  %v2099_v49 = vor.u32 %v2517_v41, %v2098_v40 }
  0x2c   : > { %345 = vmatmul.bf16.vlgmr.msra.gmra.mxu1 %v1931_v3  ;;  %335 = vmatmul.bf16.vlgmr.msra.gmra.mxu0 %v1923_v4  ;;  %v540_v3 = vrot.slane %v539_v58, 4  ;;  %v2564_v58 = vld [vmem:[%s3145_s1 + $0x1c8] sm:$0xff] }
  0x2d   : > { %428 = vmatpush.bf16.msrb.mxu1 %v2494_v51  ;;  %943 = vmatpush.bf16.msrb.mxu0 %v2538_v0  ;;  %v466_v51 = vld [vmem:[%s2736_s9 + $0x24] sm:$0x1]  ;;  %v2095_v0 = vor.u32 %v2516_v57, %v2094_v56  ;;  %v558_v6 = vrot.slane %v556_v62, 5  ;;  %v2576_v56 = vld [vmem:[%s3145_s1 + $0x228] sm:$0xff]  ;;  %v2542_v62 = vld [vmem:[%s3145_s1 + $0x158] sm:$0xff] }
  0x2e   : > { %1327 = vmatpush.bf16.msrb.mxu2 %v2558_v1  ;;  %814 = vmatmul.bf16.vlgmr.msra.gmra.mxu3 %v2091_v17  ;;  %v542_v60 = vshll.u32 %v466_v51, 16  ;;  %v2554_v1 = vld [vmem:[%s3145_s1 + $0x198] sm:$0xff]  ;;  %v572_v51 = vrot.slane %v570_v44, 5  ;;  %v2543_v57 = vld [vmem:[%s3145_s1 + $0x160] sm:$0xff]  ;;  %v1982_v44 = vld [vmem:[%s2736_s9 + $0x30] sm:$0xf] }
  0x2f   : > { %677 = vmatmul.bf16.vlgmr.msra.gmra.mxu2 %v613_v5  ;;  %1464 = vmatpush.bf16.msrb.mxu3 %v2570_v14  ;;  %v554_v5 = vrot.slane %v553_v61, 4  ;;  %v2566_v14 = vld [vmem:[%s3145_s1 + $0x1d8] sm:$0xff] }
  0x30   : > { %v544_v4 = vrot.slane %v542_v60, 5 }
  0x31   : > { %429 = vmatpush.bf16.msrb.mxu1 %v2493_v10  ;;  %944 = vmatpush.bf16.msrb.mxu0 %v2537_v15  ;;  %v471_v10 = vld [vmem:[%s2736_s9 + $0x38] sm:$0xf]  ;;  %v2487_v15 = vld [vmem:[%s3145_s1] sm:$0xff]  ;;  %v559_v17 = vsel %vm2770_vm2, %v554_v5, %v558_v6  ;;  %v2541_v5 = vld [vmem:[%s3145_s1 + $0x150] sm:$0xff] }
  0x32   : > { %1328 = vmatpush.bf16.msrb.mxu2 %v2557_v16  ;;  %v545_v16 = vsel %vm2770_vm2, %v540_v3, %v544_v4  ;;  %v578_v19 = vshll.u32 %v471_v10, 16  ;;  %v610_v28 = vunpack.c.l.b16 %v559_v17  ;;  %v1978_v17 = vld [vmem:[%s2736_s9 + $0x20] sm:$0xf] }
  0x33   : > { %1465 = vmatpush.bf16.msrb.mxu3 %v2569_v23  ;;  %v2483_v23 = vld [vmem:[%s2736_s9 + $0x4] sm:$0xf0]  ;;  %v609_v27 = vunpack.c.l.b16 %v545_v16  ;;  %v2573_v16 = vld [vmem:[%s3145_s1 + $0x210] sm:$0xff] }
  0x34   : > { %v580_v32 = vrot.slane %v578_v19, 5  ;;  %v2485_v19 = vld [vmem:[%s2736_s9 + $0x24] sm:$0xf0] }
  0x35   : > { %430 = vmatpush.bf16.msrb.mxu1 %v2492_v18  ;;  %945 = vmatpush.bf16.msrb.mxu0 %v2536_v25  ;;  %v575_v18 = vshrl.u32 %v471_v10, 16  ;;  %v2162_v25 = vld [vmem:[%s2736_s9 + $0xd8] sm:$0xf]  ;;  %v615_v39 = vpack.c.b16 %v610_v28, %v609_v27  ;;  %v2518_v10 = vld [vmem:[%s2736_s9 + $0xc4] sm:$0xf0] }
  0x36   : > { %1329 = vmatpush.bf16.msrb.mxu2 %v2556_v26  ;;  %v2527_v26 = vld [vmem:[%s2736_s9 + $0xdc] sm:$0xf0]  ;;  %v2370_v27 = vld [vmem:[%s2736_s9 + $0x50] sm:$0xf]  ;;  %v2559_v28 = vld [vmem:[%s2736_s9 + $0x54] sm:$0xf0] }
  0x37   : > { %1466 = vmatpush.bf16.msrb.mxu3 %v2568_v35  ;;  %v577_v31 = vrot.slane %v575_v18, 4  ;;  %v472_v35 = vld [vmem:[%s2736_s9 + $0x3c] sm:$0x1]  ;;  %v2572_v18 = vld [vmem:[%s3145_s1 + $0x208] sm:$0xff] }
  0x38   : > { %v584_v46 = vshll.u32 %v472_v35, 16 }
  0x39   : > { %431 = vmatpush.bf16.msrb.mxu1 %v2491_v30  ;;  %946 = vmatpush.bf16.msrb.mxu0 %v2535_v36  ;;  %v566_v30 = vrot.slane %v564_v13, 5  ;;  %v1971_v36 = vor.u32 %v2483_v23, %v1970_v22  ;;  %v581_v45 = vor.u32 %v580_v32, %v577_v31  ;;  %v2563_v13 = vld [vmem:[%s3145_s1 + $0x1c0] sm:$0xff]  ;;  %v2298_v22 = vld [vmem:[%s2736_s9 + $0x8] sm:$0xf]  ;;  %v2547_v23 = vld [vmem:[%s2736_s9 + $0xc] sm:$0xf0] }
  0x3a   : > { %1330 = vmatpush.bf16.msrb.mxu2 %v2555_v37  ;;  %v2163_v37 = vor.u32 %v2527_v26, %v2162_v25  ;;  %v2299_v26 = vor.u32 %v2547_v23, %v2298_v22  ;;  %v2208_v31 = vld [vmem:[%s2736_s9 + $0x90] sm:$0xf]  ;;  %v2210_v32 = vld [vmem:[%s2736_s9 + $0x98] sm:$0xf] }
  0x3b   : > { %1467 = vmatpush.bf16.msrb.mxu3 %v2567_v7  ;;  %v567_v42 = vor.u32 %v566_v30, %v563_v29  ;;  %v582_v52 = vrot.slane %v581_v45, 4  ;;  %v2371_v29 = vor.u32 %v2559_v28, %v2370_v27  ;;  %v2571_v30 = vld [vmem:[%s3145_s1 + $0x200] sm:$0xff]  ;;  %v997_v35 = vshrl.u32 %v2208_v31, 16  ;;  %v2486_v45 = vld [vmem:[%s2736_s9 + $0x34] sm:$0xf0] }
  0x3c   : > { %350 = vmatmul.bf16.gmra.mxu1 %v1935_v53  ;;  %340 = vmatmul.bf16.gmra.mxu0 %v1927_v54  ;;  %v586_v53 = vrot.slane %v584_v46, 5  ;;  %v2551_v54 = vld [vmem:[%s3145_s1 + $0x180] sm:$0xff]  ;;  %v2174_v46 = vld [vmem:[%s2736_s9 + $0x108] sm:$0xf] }
  0x3d   : > { %432 = vmatpush.bf16.msrb.mxu1 %v2490_v47  ;;  %947 = vmatpush.bf16.msrb.mxu0 %v2534_v50  ;;  %v2544_v47 = vld [vmem:[%s3145_s1 + $0x168] sm:$0xff]  ;;  %v568_v50 = vrot.slane %v567_v42, 4  ;;  %v1532_v42 = vshrl.u32 %v2418_v34, 16 }
  0x3e   : > { %1331 = vmatpush.bf16.msrb.mxu2 %v2554_v1  ;;  %819 = vmatmul.bf16.gmra.mxu3 %v2095_v0  ;;  %v587_v61 = vsel %vm2770_vm2, %v582_v52, %v586_v53  ;;  %v2484_v0 = vld [vmem:[%s2736_s9 + $0x14] sm:$0xf0]  ;;  %v2166_v1 = vld [vmem:[%s2736_s9 + $0xe8] sm:$0xf] }
  0x3f   : > { %682 = vmatmul.bf16.gmra.mxu2 %v614_v55  ;;  %1468 = vmatpush.bf16.msrb.mxu3 %v2566_v14  ;;  %v2565_v55 = vld [vmem:[%s3145_s1 + $0x1d0] sm:$0xff]  ;;  %v573_v60 = vsel %vm2770_vm2, %v568_v50, %v572_v51  ;;  %v612_v4 = vunpack.c.l.b16 %v587_v61  ;;  %v2574_v14 = vld [vmem:[%s3145_s1 + $0x218] sm:$0xff]  ;;  %v999_v51 = vrot.slane %v997_v35, 4 }
  0x40   : > { %v611_v3 = vunpack.c.l.b16 %v573_v60  ;;  %v2211_v50 = vld [vmem:[%s2736_s9 + $0x9c] sm:$0x1]  ;;  %v2417_v60 = vld [vmem:[%s2736_s9 + $0xc] sm:$0x1]  ;;  %v2419_v61 = vld [vmem:[%s2736_s9 + $0x14] sm:$0x1] }
  0x41   : > { %433 = vmatpush.bf16.msrb.mxu1 %v2489_v59  ;;  %948 = vmatpush.bf16.msrb.mxu0 %v2533_v63  ;;  %v2575_v59 = vld [vmem:[%s3145_s1 + $0x220] sm:$0xff]  ;;  %v1974_v63 = vld [vmem:[%s2736_s9 + $0x10] sm:$0xf] }
  0x42   : > { %1332 = vmatpush.bf16.msrb.mxu2 %v2553_v11  ;;  %v1975_v6 = vor.u32 %v2484_v0, %v1974_v63  ;;  %v616_v8 = vpack.c.b16 %v612_v4, %v611_v3  ;;  %v1020_v0 = vshll.u32 %v2211_v50, 16 }
  0x43   : > { %1469 = vmatpush.bf16.msrb.mxu3 %v2565_v55  ;;  %v2548_v55 = vld [vmem:[%s2736_s9 + $0x1c] sm:$0xf0] }
  0x45   : > { %434 = vmatpush.bf16.msrb.mxu1 %v2488_v2  ;;  %949 = vmatpush.bf16.msrb.mxu0 %v2532_v9  ;;  %v2528_v2 = vld [vmem:[%s2736_s9 + $0xec] sm:$0xf0]  ;;  %v2102_v9 = vld [vmem:[%s2736_s9 + $0xc0] sm:$0xf] }
  0x46   : > { %1333 = vmatpush.bf16.msrb.mxu2 %v2552_v48  ;;  %v2167_v7 = vor.u32 %v2528_v2, %v2166_v1  ;;  %v2103_v11 = vor.u32 %v2518_v10, %v2102_v9  ;;  %v2302_v48 = vld [vmem:[%s2736_s9 + $0x18] sm:$0xf]  ;;  %v1541_v10 = vshll.u32 %v2419_v61, 16 }
  0x47   : > { %1470 = vmatpush.bf16.msrb.mxu3 %v2564_v58  ;;  %v1534_v58 = vrot.slane %v1532_v42, 4  ;;  %v2303_v2 = vor.u32 %v2548_v55, %v2302_v48  ;;  %v2215_v42 = vld [vmem:[%s2736_s9 + $0xac] sm:$0x1] }
  0x48   : > { %v1543_v23 = vrot.slane %v1541_v10, 5 }
  0x49   : > { %435 = vmatpush.bf16.msrb.mxu1 %v2487_v15  ;;  %950 = vmatpush.bf16.msrb.mxu0 %v2531_v21  ;;  %v2539_v15 = vld [vmem:[%s3145_s1 + $0x140] sm:$0xff] }
  0x4a   : > { %1334 = vmatpush.bf16.msrb.mxu2 %v2551_v54  ;;  %v2529_v21 = vld [vmem:[%s2736_s9 + $0xfc] sm:$0xf0] }
  0x4b   : > { %1471 = vmatpush.bf16.msrb.mxu3 %v2563_v13  ;;  %v2212_v13 = vld [vmem:[%s2736_s9 + $0xa0] sm:$0xf] }
  0x4c   : > { %436 = vmatmul.bf16.vlgmr.msrb.gmra.mxu1 %v1971_v36  ;;  %951 = vmatmul.bf16.vlgmr.msrb.gmra.mxu0 %v2163_v37  ;;  %v1000_v36 = vshll.u32 %v2208_v31, 16  ;;  %v1011_v37 = vshrl.u32 %v2210_v32, 16 }
  0x4d   : > { %1189 = vmatpush.bf16.msra.mxu1 %v2546_v20  ;;  %1710 = vmatpush.bf16.msra.mxu0 %v2578_v24  ;;  %v2170_v20 = vld [vmem:[%s2736_s9 + $0xf8] sm:$0xf] }
  0x4e   : > { %824 = vmatmul.bf16.gmra.mxu3 %v2099_v49  ;;  %2610 = vmatpush.bf16.msra.mxu2 %v2578_v24  ;;  %v1979_v24 = vor.u32 %v2485_v19, %v1978_v17  ;;  %v2171_v25 = vor.u32 %v2529_v21, %v2170_v20  ;;  %v2209_v49 = vld [vmem:[%s2736_s9 + $0x94] sm:$0x1]  ;;  %v1002_v52 = vrot.slane %v1000_v36, 5  ;;  %v1013_v53 = vrot.slane %v1011_v37, 4  ;;  %v2422_v19 = vld [vmem:[%s2736_s9 + $0x20] sm:$0xf] }
  0x4f   : > { %687 = vmatmul.bf16.gmra.mxu2 %v615_v39  ;;  %v1014_v39 = vshll.u32 %v2210_v32, 16  ;;  %v1006_v63 = vshll.u32 %v2209_v49, 16  ;;  %v1563_v31 = vshll.u32 %v2422_v19, 16  ;;  %v2213_v36 = vld [vmem:[%s2736_s9 + $0xa4] sm:$0x1] }
  0x50   : > { %v1003_v3 = vor.u32 %v1002_v52, %v999_v51  ;;  %v2421_v51 = vld [vmem:[%s2736_s9 + $0x1c] sm:$0x1]  ;;  %v2423_v52 = vld [vmem:[%s2736_s9 + $0x24] sm:$0x1] }
  0x51   : > { %1190 = vmatpush.bf16.msra.mxu1 %v2545_v33  ;;  %1711 = vmatpush.bf16.msra.mxu0 %v2577_v43  ;;  %v2416_v33 = vld [vmem:[%s2736_s9 + $0x8] sm:$0xf]  ;;  %v1016_v54 = vrot.slane %v1014_v39, 5 }
  0x52   : > { %2611 = vmatpush.bf16.msra.mxu2 %v2577_v43  ;;  %v1518_v40 = vshrl.u32 %v2416_v33, 16  ;;  %v1521_v41 = vshll.u32 %v2416_v33, 16  ;;  %v1535_v43 = vshll.u32 %v2418_v34, 16 }
  0x53   : > { %v1017_v4 = vor.u32 %v1016_v54, %v1013_v53  ;;  %v2306_v53 = vld [vmem:[%s2736_s9 + $0x28] sm:$0xf]  ;;  %v2549_v54 = vld [vmem:[%s2736_s9 + $0x2c] sm:$0xf0] }
  0x55   : > { %1191 = vmatpush.bf16.msra.mxu1 %v2544_v47  ;;  %1712 = vmatpush.bf16.msra.mxu0 %v2576_v56  ;;  %v2530_v47 = vld [vmem:[%s2736_s9 + $0x10c] sm:$0xf0] }
  0x56   : > { %2612 = vmatpush.bf16.msra.mxu2 %v2576_v56  ;;  %v1520_v56 = vrot.slane %v1518_v40, 4  ;;  %v2175_v1 = vor.u32 %v2530_v47, %v2174_v46  ;;  %v1565_v46 = vrot.slane %v1563_v31, 5 }
  0x59   : > { %1192 = vmatpush.bf16.msra.mxu1 %v2543_v57  ;;  %1713 = vmatpush.bf16.msra.mxu0 %v2575_v59  ;;  %v1523_v57 = vrot.slane %v1521_v41, 5 }
  0x5a   : > { %2613 = vmatpush.bf16.msra.mxu2 %v2575_v59  ;;  %v1537_v59 = vrot.slane %v1535_v43, 5 }
  0x5c   : > { %441 = vmatmul.bf16.gmra.mxu1 %v1975_v6  ;;  %956 = vmatmul.bf16.gmra.mxu0 %v2167_v7  ;;  %v2560_v6 = vld [vmem:[%s2736_s9 + $0x64] sm:$0xf0]  ;;  %v1524_v7 = vor.u32 %v1523_v57, %v1520_v56  ;;  %v1538_v9 = vor.u32 %v1537_v59, %v1534_v58  ;;  %v1034_v56 = vshll.u32 %v2213_v36, 16  ;;  %v1048_v58 = vshll.u32 %v2215_v42, 16  ;;  %v2217_v42 = vld [vmem:[%s2736_s9 + $0xb4] sm:$0x1] }
  0x5d   : > { %1193 = vmatpush.bf16.msra.mxu1 %v2542_v62  ;;  %1714 = vmatpush.bf16.msra.mxu0 %v2574_v14  ;;  %v1983_v62 = vor.u32 %v2486_v45, %v1982_v44 }
  0x5e   : > { %829 = vmatmul.bf16.gmra.mxu3 %v2103_v11  ;;  %2614 = vmatpush.bf16.msra.mxu2 %v2574_v14  ;;  %v1008_v11 = vrot.slane %v1006_v63, 5  ;;  %v2214_v14 = vld [vmem:[%s2736_s9 + $0xa8] sm:$0xf]  ;;  %v1525_v20 = vrot.slane %v1524_v7, 4  ;;  %v1539_v22 = vrot.slane %v1538_v9, 4  ;;  %v1050_v7 = vrot.slane %v1048_v58, 5 }
  0x5f   : > { %692 = vmatmul.bf16.gmra.mxu2 %v616_v8  ;;  %v1527_v8 = vshll.u32 %v2417_v60, 16  ;;  %v1042_v27 = vshll.u32 %v2214_v14, 16  ;;  %v1555_v60 = vshll.u32 %v2421_v51, 16  ;;  %v2310_v51 = vld [vmem:[%s2736_s9 + $0x38] sm:$0xf] }
  0x60   : > { %v1544_v35 = vsel %vm2770_vm2, %v1539_v22, %v1543_v23  ;;  %v2429_v58 = vld [vmem:[%s2736_s9 + $0x3c] sm:$0x1] }
  0x61   : > { %1194 = vmatpush.bf16.msra.mxu1 %v2541_v5  ;;  %1715 = vmatpush.bf16.msra.mxu0 %v2573_v16  ;;  %v2374_v5 = vld [vmem:[%s2736_s9 + $0x60] sm:$0xf]  ;;  %v1529_v21 = vrot.slane %v1527_v8, 5  ;;  %v1044_v41 = vrot.slane %v1042_v27, 5  ;;  %v1647_v50 = vunpack.c.l.b16 %v1544_v35  ;;  %v1557_v9 = vrot.slane %v1555_v60, 5 }
  0x62   : > { %2615 = vmatpush.bf16.msra.mxu2 %v2573_v16  ;;  %v1018_v16 = vrot.slane %v1017_v4, 4  ;;  %v2375_v17 = vor.u32 %v2560_v6, %v2374_v5  ;;  %v1036_v5 = vrot.slane %v1034_v56, 5  ;;  %v2550_v56 = vld [vmem:[%s2736_s9 + $0x3c] sm:$0xf0] }
  0x63   : > { %v1530_v34 = vsel %vm2770_vm2, %v1525_v20, %v1529_v21  ;;  %v2428_v21 = vld [vmem:[%s2736_s9 + $0x38] sm:$0xf] }
  0x64   : > { %v1646_v49 = vunpack.c.l.b16 %v1530_v34  ;;  %v1605_v34 = vshll.u32 %v2428_v21, 16 }
  0x65   : > { %1195 = vmatpush.bf16.msra.mxu1 %v2540_v12  ;;  %1716 = vmatpush.bf16.msra.mxu0 %v2572_v18  ;;  %v1022_v12 = vrot.slane %v1020_v0, 5 }
  0x66   : > { %2616 = vmatpush.bf16.msra.mxu2 %v2572_v18  ;;  %v2420_v18 = vld [vmem:[%s2736_s9 + $0x18] sm:$0xf]  ;;  %v1654_v0 = vpack.c.b16 %v1647_v50, %v1646_v49 }
  0x67   : > { %v1546_v28 = vshrl.u32 %v2420_v18, 16  ;;  %v1023_v33 = vsel %vm2770_vm2, %v1018_v16, %v1022_v12  ;;  %v2216_v12 = vld [vmem:[%s2736_s9 + $0xb0] sm:$0xf] }
  0x68   : > { %v1126_v48 = vunpack.c.l.b16 %v1023_v33  ;;  %v2426_v16 = vld [vmem:[%s2736_s9 + $0x30] sm:$0xf]  ;;  %v1056_v20 = vshll.u32 %v2216_v12, 16  ;;  %v1602_v33 = vshrl.u32 %v2428_v21, 16 }
  0x69   : > { %1196 = vmatpush.bf16.msra.mxu1 %v2539_v15  ;;  %1717 = vmatpush.bf16.msra.mxu0 %v2571_v30  ;;  %v1004_v15 = vrot.slane %v1003_v3, 4  ;;  %v1548_v43 = vrot.slane %v1546_v28, 4  ;;  %v2561_v3 = vld [vmem:[%s2736_s9 + $0x74] sm:$0xf0] }
  0x6a   : > { %2617 = vmatpush.bf16.msra.mxu2 %v2571_v30  ;;  %v1560_v30 = vshrl.u32 %v2422_v19, 16  ;;  %v1053_v19 = vshrl.u32 %v2216_v12, 16  ;;  %v1058_v36 = vrot.slane %v1056_v20, 5 }
  0x6b   : > { %v1009_v32 = vsel %vm2770_vm2, %v1004_v15, %v1008_v11  ;;  %v2424_v15 = vld [vmem:[%s2736_s9 + $0x28] sm:$0xf] }
  0x6c   : > { %446 = vmatmul.bf16.gmra.mxu1 %v1979_v24  ;;  %961 = vmatmul.bf16.gmra.mxu0 %v2171_v25  ;;  %v1025_v24 = vshrl.u32 %v2212_v13, 16  ;;  %v1028_v25 = vshll.u32 %v2212_v13, 16  ;;  %v1562_v45 = vrot.slane %v1560_v30, 4  ;;  %v1125_v47 = vunpack.c.l.b16 %v1009_v32 }
  0x6d   : > { %v1574_v27 = vshrl.u32 %v2424_v15, 16  ;;  %v1577_v28 = vshll.u32 %v2424_v15, 16  ;;  %v1591_v30 = vshll.u32 %v2426_v16, 16  ;;  %v1055_v35 = vrot.slane %v1053_v19, 4 }
  0x6e   : > { %1472 = vmatmul.bf16.vlgmr.msrb.gmra.mxu3 %v2371_v29  ;;  %v1549_v29 = vshll.u32 %v2420_v18, 16  ;;  %v1027_v37 = vrot.slane %v1025_v24, 4  ;;  %v1030_v39 = vrot.slane %v1028_v25, 5  ;;  %v1566_v61 = vor.u32 %v1565_v46, %v1562_v45  ;;  %v2425_v46 = vld [vmem:[%s2736_s9 + $0x2c] sm:$0x1] }
  0x6f   : > { %1335 = vmatmul.bf16.vlgmr.msrb.gmra.mxu2 %v2299_v26  ;;  %v1039_v26 = vshrl.u32 %v2214_v14, 16  ;;  %v1133_v63 = vpack.c.b16 %v1126_v48, %v1125_v47  ;;  %v2218_v14 = vld [vmem:[%s2736_s9 + $0xb8] sm:$0xf]  ;;  %v1576_v47 = vrot.slane %v1574_v27, 4  ;;  %v1579_v48 = vrot.slane %v1577_v28, 5 }
  0x70   : > { %v1551_v44 = vrot.slane %v1549_v29, 5  ;;  %v1031_v55 = vor.u32 %v1030_v39, %v1027_v37  ;;  %v1567_v10 = vrot.slane %v1566_v61, 4  ;;  %v1067_v24 = vshrl.u32 %v2218_v14, 16  ;;  %v2222_v27 = vld [vmem:[%s2736_s9 + $0xc8] sm:$0xf] }
  0x71   : > { %v1041_v40 = vrot.slane %v1039_v26, 4  ;;  %v1070_v25 = vshll.u32 %v2218_v14, 16  ;;  %v2430_v26 = vld [vmem:[%s2736_s9 + $0x40] sm:$0xf]  ;;  %v1588_v29 = vshrl.u32 %v2426_v16, 16  ;;  %v1593_v50 = vrot.slane %v1591_v30, 5 }
  0x72   : > { %v1552_v59 = vor.u32 %v1551_v44, %v1548_v43  ;;  %v1032_v4 = vrot.slane %v1031_v55, 4  ;;  %v1616_v37 = vshrl.u32 %v2430_v26, 16  ;;  %v1619_v39 = vshll.u32 %v2430_v26, 16  ;;  %v2219_v43 = vld [vmem:[%s2736_s9 + $0xbc] sm:$0x1] }
  0x73   : > { %v1045_v57 = vor.u32 %v1044_v41, %v1041_v40  ;;  %v1069_v44 = vrot.slane %v1067_v24, 4  ;;  %v1072_v45 = vrot.slane %v1070_v25, 5  ;;  %v1590_v49 = vrot.slane %v1588_v29, 4  ;;  %v2220_v24 = vld [vmem:[%s2736_s9 + $0xc0] sm:$0xf] }
  0x74   : > { %v1553_v8 = vrot.slane %v1552_v59, 4  ;;  %v1618_v59 = vrot.slane %v1616_v37, 4  ;;  %v1621_v60 = vrot.slane %v1619_v39, 5  ;;  %v1062_v61 = vshll.u32 %v2217_v42, 16 }
  0x75   : > { %v1046_v6 = vrot.slane %v1045_v57, 4  ;;  %v1059_v57 = vor.u32 %v1058_v36, %v1055_v35  ;;  %v1095_v35 = vshrl.u32 %v2222_v27, 16  ;;  %v1098_v36 = vshll.u32 %v2222_v27, 16 }
  0x76   : > { %v1558_v22 = vsel %vm2770_vm2, %v1553_v8, %v1557_v9  ;;  %v2562_v8 = vld [vmem:[%s2736_s9 + $0x84] sm:$0xf0]  ;;  %v1622_v12 = vor.u32 %v1621_v60, %v1618_v59  ;;  %v1064_v14 = vrot.slane %v1062_v61, 5 }
  0x77   : > { %v1051_v18 = vsel %vm2770_vm2, %v1046_v6, %v1050_v7  ;;  %v1648_v40 = vunpack.c.l.b16 %v1558_v22  ;;  %v2311_v6 = vor.u32 %v2550_v56, %v2310_v51  ;;  %v2382_v7 = vld [vmem:[%s2736_s9 + $0x80] sm:$0xf] }
  0x78   : > { %v1128_v32 = vunpack.c.l.b16 %v1051_v18  ;;  %v2383_v18 = vor.u32 %v2562_v8, %v2382_v7  ;;  %v1623_v25 = vrot.slane %v1622_v12, 4 }
  0x7c   : > { %451 = vmatmul.bf16.gmra.mxu1 %v1983_v62  ;;  %966 = vmatmul.bf16.gmra.mxu0 %v2175_v1  ;;  %v1569_v62 = vshll.u32 %v2423_v52, 16  ;;  %v2307_v1 = vor.u32 %v2549_v54, %v2306_v53  ;;  %v2427_v52 = vld [vmem:[%s2736_s9 + $0x34] sm:$0x1]  ;;  %v1604_v53 = vrot.slane %v1602_v33, 4  ;;  %v1607_v54 = vrot.slane %v1605_v34, 5 }
  0x7d   : > { %v1084_v34 = vshll.u32 %v2220_v24, 16 }
  0x7e   : > { %1477 = vmatmul.bf16.gmra.mxu3 %v2375_v17  ;;  %v1571_v11 = vrot.slane %v1569_v62, 5  ;;  %v1037_v17 = vsel %vm2770_vm2, %v1032_v4, %v1036_v5  ;;  %v1073_v62 = vor.u32 %v1072_v45, %v1069_v44  ;;  %v1594_v4 = vor.u32 %v1593_v50, %v1590_v49  ;;  %v2223_v50 = vld [vmem:[%s2736_s9 + $0xcc] sm:$0x1] }
  0x7f   : > { %1340 = vmatmul.bf16.gmra.mxu2 %v2303_v2  ;;  %v2378_v2 = vld [vmem:[%s2736_s9 + $0x70] sm:$0xf]  ;;  %v1127_v31 = vunpack.c.l.b16 %v1037_v17  ;;  %v1597_v5 = vshll.u32 %v2427_v52, 16  ;;  %v1608_v9 = vor.u32 %v1607_v54, %v1604_v53  ;;  %v1100_v49 = vrot.slane %v1098_v36, 5 }
  0x80   : > { %v2379_v13 = vor.u32 %v2561_v3, %v2378_v2  ;;  %v1572_v23 = vsel %vm2770_vm2, %v1567_v10, %v1571_v11  ;;  %v1580_v3 = vor.u32 %v1579_v48, %v1576_v47  ;;  %v1611_v10 = vshll.u32 %v2429_v58, 16 }
  0x81   : > { %v1649_v41 = vunpack.c.l.b16 %v1572_v23  ;;  %v1134_v55 = vpack.c.b16 %v1128_v32, %v1127_v31  ;;  %v1060_v11 = vrot.slane %v1059_v57, 4  ;;  %v1074_v15 = vrot.slane %v1073_v62, 4 }
  0x82   : > { %v1581_v19 = vrot.slane %v1580_v3, 4  ;;  %v1595_v20 = vrot.slane %v1594_v4, 4  ;;  %v1599_v21 = vrot.slane %v1597_v5, 5  ;;  %v1609_v22 = vrot.slane %v1608_v9, 4 }
  0x83   : > { %v1655_v2 = vpack.c.b16 %v1649_v41, %v1648_v40  ;;  %v1613_v23 = vrot.slane %v1611_v10, 5  ;;  %v1065_v28 = vsel %vm2770_vm2, %v1060_v11, %v1064_v14  ;;  %v1081_v32 = vshrl.u32 %v2220_v24, 16 }
  0x84   : > { %v1600_v31 = vsel %vm2770_vm2, %v1595_v20, %v1599_v21  ;;  %v1129_v39 = vunpack.c.l.b16 %v1065_v28  ;;  %v1086_v47 = vrot.slane %v1084_v34, 5  ;;  %v1097_v48 = vrot.slane %v1095_v35, 4 }
  0x85   : > { %v1614_v33 = vsel %vm2770_vm2, %v1609_v22, %v1613_v23  ;;  %v1651_v42 = vunpack.c.l.b16 %v1600_v31  ;;  %v1083_v44 = vrot.slane %v1081_v32, 4  ;;  %v1104_v59 = vshll.u32 %v2223_v50, 16 }
  0x86   : > { %v1101_v58 = vor.u32 %v1100_v49, %v1097_v48 }
  0x87   : > { %v1087_v57 = vor.u32 %v1086_v47, %v1083_v44 }
  0x88   : > { %v1102_v62 = vrot.slane %v1101_v58, 4 }
  0x89   : > { %v1088_v60 = vrot.slane %v1087_v57, 4 }
  0x8c   : > { %1197 = vmatmul.bf16.vlgmr.msra.gmra.mxu1 %v1133_v63  ;;  %1718 = vmatmul.bf16.vlgmr.msra.gmra.mxu0 %v1654_v0  ;;  %v1076_v63 = vshll.u32 %v2219_v43, 16  ;;  %v1583_v0 = vshll.u32 %v2425_v46, 16  ;;  %v1652_v43 = vunpack.c.l.b16 %v1614_v33  ;;  %v2221_v46 = vld [vmem:[%s2736_s9 + $0xc4] sm:$0x1] }
  0x8d   : > { %v1090_v53 = vshll.u32 %v2221_v46, 16 }
  0x8e   : > { %1482 = vmatmul.bf16.gmra.mxu3 %v2379_v13  ;;  %v1078_v16 = vrot.slane %v1076_v63, 5  ;;  %v1585_v17 = vrot.slane %v1583_v0, 5  ;;  %v1106_v63 = vrot.slane %v1104_v59, 5 }
  0x8f   : > { %1345 = vmatmul.bf16.gmra.mxu2 %v2307_v1  ;;  %v2431_v1 = vld [vmem:[%s2736_s9 + $0x44] sm:$0x1]  ;;  %v1092_v61 = vrot.slane %v1090_v53, 5 }
  0x90   : > { %v1625_v13 = vshll.u32 %v2431_v1, 16  ;;  %v1079_v29 = vsel %vm2770_vm2, %v1074_v15, %v1078_v16  ;;  %v1586_v30 = vsel %vm2770_vm2, %v1581_v19, %v1585_v17  ;;  %v1107_v4 = vsel %vm2770_vm2, %v1102_v62, %v1106_v63 }
  0x91   : > { %v1130_v40 = vunpack.c.l.b16 %v1079_v29  ;;  %v1650_v41 = vunpack.c.l.b16 %v1586_v30  ;;  %v1093_v3 = vsel %vm2770_vm2, %v1088_v60, %v1092_v61  ;;  %v1132_v7 = vunpack.c.l.b16 %v1107_v4 }
  0x92   : > { %v1627_v26 = vrot.slane %v1625_v13, 5 }
  0x93   : > { %v1135_v51 = vpack.c.b16 %v1130_v40, %v1129_v39  ;;  %v1656_v52 = vpack.c.b16 %v1651_v42, %v1650_v41 }
  0x94   : > { %v1628_v37 = vsel %vm2770_vm2, %v1623_v25, %v1627_v26 }
  0x95   : > { %v1653_v45 = vunpack.c.l.b16 %v1628_v37 }
  0x97   : > { %v1657_v56 = vpack.c.b16 %v1653_v45, %v1652_v43 }
  0x9c   : > { %1202 = vmatmul.bf16.gmra.mxu1 %v1134_v55  ;;  %1723 = vmatmul.bf16.gmra.mxu0 %v1655_v2 }
  0x9e   : > { %1487 = vmatmul.bf16.gmra.mxu3 %v2383_v18 }
  0x9f   : > { %1350 = vmatmul.bf16.gmra.mxu2 %v2311_v6  ;;  %v1131_v6 = vunpack.c.l.b16 %v1093_v3 }
  0xa1   : > { %v1136_v8 = vpack.c.b16 %v1132_v7, %v1131_v6 }
  0xa9   : > { %v346_v54 = vpop.f32.mrf.mxu1  ;;  %v336_v55 = vpop.f32.mrf.mxu0 }
  0xac   : > { %1207 = vmatmul.bf16.gmra.mxu1 %v1135_v51  ;;  %1728 = vmatmul.bf16.gmra.mxu0 %v1656_v52 }
  0xaf   : > { %1733 = vmatmul.bf16.vlgmr.msra.gmra.mxu2 %v1657_v56 }
  0xb1   : > { %v348_v1 = vpop.f32.mrf.mxu1  ;;  %v338_v2 = vpop.f32.mrf.mxu0 }
  0xb2   : > { %v678_v0 = vpop.f32.mrf.mxu2  ;;  %v815_v5 = vpop.f32.mrf.mxu3 }
  0xb9   : > { %v351_v10 = vpop.f32.mrf.mxu1  ;;  %v341_v11 = vpop.f32.mrf.mxu0 }
  0xba   : > { %v680_v9 = vpop.f32.mrf.mxu2  ;;  %v3078_v12 = vpop.f32.mrf.mxu3 }
  0xbc   : > { %1212 = vmatmul.bf16.gmra.mxu1 %v1136_v8 }
  0xc1   : > { %v353_v14 = vpop.f32.mrf.mxu1  ;;  %v343_v15 = vpop.f32.mrf.mxu0 }
  0xc2   : > { %v683_v13 = vpop.f32.mrf.mxu2  ;;  %v820_v16 = vpop.f32.mrf.mxu3 }
  0xc9   : > { %v437_v18 = vpop.f32.mrf.mxu1  ;;  %v952_v19 = vpop.f32.mrf.mxu0 }
  0xca   : > { %v685_v17 = vpop.f32.mrf.mxu2  ;;  %v438_v20 = vadd.f32 %v437_v18, %v336_v55  ;;  %v3080_v21 = vpop.f32.mrf.mxu3 }
  0xcc   : > { %v698_v38 = vadd.f32 %v678_v0, %v438_v20 }
  0xce   : > { %v835_v22 = vadd.f32 %v815_v5, %v698_v38 }
  0xd0   : > { %v972_v23 = vadd.f32 %v952_v19, %v835_v22 }
  0xd1   : > { %v439_v25 = vpop.f32.mrf.mxu1  ;;  %v954_v26 = vpop.f32.mrf.mxu0 }
  0xd2   : > { %v688_v24 = vpop.f32.mrf.mxu2  ;;  %v440_v27 = vadd.f32 %v439_v25, %v338_v2  ;;  %v825_v29 = vpop.f32.mrf.mxu3 }
  0xd4   : > { %v699_v28 = vadd.f32 %v680_v9, %v440_v27 }
  0xd9   : > { %v442_v31 = vpop.f32.mrf.mxu1  ;;  %v957_v32 = vpop.f32.mrf.mxu0 }
  0xda   : > { %v690_v30 = vpop.f32.mrf.mxu2  ;;  %v443_v33 = vadd.f32 %v442_v31, %v341_v11  ;;  %v3082_v39 = vpop.f32.mrf.mxu3 }
  0xdc   : > { %v700_v34 = vadd.f32 %v683_v13, %v443_v33 }
  0xde   : > { %v837_v35 = vadd.f32 %v820_v16, %v700_v34 }
  0xe0   : > { %v974_v36 = vadd.f32 %v957_v32, %v837_v35 }
  0xe1   : > { %v444_v40 = vpop.f32.mrf.mxu1  ;;  %v3084_v41 = vpop.f32.mrf.mxu0 }
  0xe2   : > { %v693_v37 = vpop.f32.mrf.mxu2  ;;  %v445_v42 = vadd.f32 %v444_v40, %v343_v15  ;;  %v830_v48 = vpop.f32.mrf.mxu3 }
  0xe4   : > { %v701_v43 = vadd.f32 %v685_v17, %v445_v42 }
  0xe6   : > { %v838_v31 = vadd.f32 %v3080_v21, %v701_v43 }
  0xe8   : > { %v975_v42 = vadd.f32 %v3084_v41, %v838_v31 }
  0xe9   : > { %v447_v45 = vpop.f32.mrf.mxu1  ;;  %v962_v46 = vpop.f32.mrf.mxu0 }
  0xea   : > { %v695_v44 = vpop.f32.mrf.mxu2  ;;  %v448_v47 = vadd.f32 %v447_v45, %v346_v54  ;;  %v3092_v58 = vpop.f32.mrf.mxu3 }
  0xec   : > { %v702_v49 = vadd.f32 %v688_v24, %v448_v47 }
  0xee   : > { %v839_v50 = vadd.f32 %v825_v29, %v702_v49 }
  0xf0   : > { %v3086_v51 = vadd.f32 %v962_v46, %v839_v50 }
  0xf1   : > { %v449_v53 = vpop.f32.mrf.mxu1  ;;  %v3088_v55 = vpop.f32.mrf.mxu0 }
  0xf2   : > { %v1336_v52 = vpop.f32.mrf.mxu2  ;;  %v450_v56 = vadd.f32 %v449_v53, %v348_v1  ;;  %v1473_v0 = vpop.f32.mrf.mxu3 }
  0xf4   : > { %v3090_v57 = vadd.f32 %v690_v30, %v450_v56 }
  0xf9   : > { %v452_v60 = vpop.f32.mrf.mxu1  ;;  %v967_v61 = vpop.f32.mrf.mxu0 }
  0xfa   : > { %v1338_v59 = vpop.f32.mrf.mxu2  ;;  %v453_v62 = vadd.f32 %v452_v60, %v351_v10  ;;  %v1475_v7 = vpop.f32.mrf.mxu3  ;;  %v836_v10 = vadd.f32 %v3078_v12, %v699_v28  ;;  %v840_v60 = vadd.f32 %v3082_v39, %v3090_v57 }
  0xfc   : > { %v704_v63 = vadd.f32 %v693_v37, %v453_v62  ;;  %v973_v16 = vadd.f32 %v954_v26, %v836_v10 }
  0xfe   : > { %v841_v54 = vadd.f32 %v830_v48, %v704_v63 }
 0x100   : > { %v3094_v2 = vadd.f32 %v967_v61, %v841_v54 }
 0x101   : > { %v454_v4 = vpop.f32.mrf.mxu1  ;;  %v3096_v5 = vpop.f32.mrf.mxu0 }
 0x102   : > { %v1341_v3 = vpop.f32.mrf.mxu2  ;;  %v455_v6 = vadd.f32 %v454_v4, %v353_v14  ;;  %v1478_v38 = vpop.f32.mrf.mxu3  ;;  %v3105_v14 = vld [vmem:[%s3146_s2] ss:$0 sm:$0xff] }
 0x104   : > { %v3098_v1 = vadd.f32 %v695_v44, %v455_v6 }
 0x109   : > { %v1198_v8 = vpop.f32.mrf.mxu1  ;;  %v1719_v9 = vpop.f32.mrf.mxu0 }
 0x10a   : > { %v1218_v11 = vadd.f32 %v1198_v8, %v972_v23  ;;  %v1343_v13 = vpop.f32.mrf.mxu2  ;;  %v1480_v35 = vpop.f32.mrf.mxu3 }
 0x10c   : > { %v1356_v15 = vadd.f32 %v1336_v52, %v1218_v11 }
 0x10e   : > { %v1493_v17 = vadd.f32 %v1473_v0, %v1356_v15  ;;  %v977_v0 = vadd.f32 %v3088_v55, %v840_v60 }
 0x110   : > { %v1739_v22 = vadd.f32 %v1719_v9, %v1493_v17  ;;  %v842_v17 = vadd.f32 %v3092_v58, %v3098_v1 }
 0x111   : > { %v1200_v18 = vpop.f32.mrf.mxu1  ;;  %v1721_v19 = vpop.f32.mrf.mxu0 }
 0x112   : > { %v1219_v20 = vadd.f32 %v1200_v18, %v973_v16  ;;  %v1346_v25 = vpop.f32.mrf.mxu2  ;;  %v1751_v12 = vadd.f32 %v3105_v14, %v1739_v22  ;;  %v1483_v48 = vpop.f32.mrf.mxu3 }
 0x114   : > { %v1357_v24 = vadd.f32 %v1338_v59, %v1219_v20  ;;  %v1759_v32 = vmax.f32 %v1751_v12, 0.0 }
 0x116   : > { %v1494_v23 = vadd.f32 %v1475_v7, %v1357_v24  ;;  %v979_v24 = vadd.f32 %v3096_v5, %v842_v17 }
 0x118   : > { %v1740_v27 = vadd.f32 %v1721_v19, %v1494_v23 }
 0x119   : > { %v1203_v26 = vpop.f32.mrf.mxu1  ;;  %v1724_v28 = vpop.f32.mrf.mxu0 }
 0x11a   : > { %v1752_v29 = vadd.f32 %v3105_v14, %v1740_v27  ;;  %v1220_v30 = vadd.f32 %v1203_v26, %v974_v36  ;;  %v1348_v40 = vpop.f32.mrf.mxu2  ;;  %v1485_v4 = vpop.f32.mrf.mxu3 }
 0x11c   : > { %v1760_v33 = vmax.f32 %v1752_v29, 0.0  ;;  %v1358_v34 = vadd.f32 %v1341_v3, %v1220_v30 }
 0x11e   : > { %v2582_v37 = vpack.c.bf16 %v1760_v33, %v1759_v32  ;;  %v1495_v44 = vadd.f32 %v1478_v38, %v1358_v34 }
 0x120   : > { %2583 = vst [vmem:[%s3114_s10] sm:$0xff] %v2582_v37   ;;  %v1741_v21 = vadd.f32 %v1724_v28, %v1495_v44 }
 0x121   : > { %v1205_v45 = vpop.f32.mrf.mxu1  ;;  %v1726_v36 = vpop.f32.mrf.mxu0 }
 0x122   : > { %v1221_v46 = vadd.f32 %v1205_v45, %v975_v42  ;;  %v1753_v49 = vadd.f32 %v3105_v14, %v1741_v21  ;;  %v1351_v52 = vpop.f32.mrf.mxu2  ;;  %v1488_v55 = vpop.f32.mrf.mxu3 }
 0x124   : > { %v1359_v43 = vadd.f32 %v1343_v13, %v1221_v46  ;;  %v1761_v61 = vmax.f32 %v1753_v49, 0.0 }
 0x126   : > { %v1496_v47 = vadd.f32 %v1480_v35, %v1359_v43 }
 0x128   : > { %v1742_v50 = vadd.f32 %v1726_v36, %v1496_v47 }
 0x129   : > { %v1208_v53 = vpop.f32.mrf.mxu1  ;;  %v1729_v41 = vpop.f32.mrf.mxu0 }
 0x12a   : > { %v1754_v56 = vadd.f32 %v3105_v14, %v1742_v50  ;;  %v1222_v59 = vadd.f32 %v1208_v53, %v3086_v51  ;;  %v1353_v8 = vpop.f32.mrf.mxu2  ;;  %v1490_v28 = vpop.f32.mrf.mxu3 }
 0x12c   : > { %v1762_v62 = vmax.f32 %v1754_v56, 0.0  ;;  %v1360_v63 = vadd.f32 %v1346_v25, %v1222_v59 }
 0x12e   : > { %v2587_v54 = vpack.c.bf16 %v1762_v62, %v1761_v61  ;;  %v1497_v3 = vadd.f32 %v1483_v48, %v1360_v63 }
 0x130   : > { %2599 = vst [vmem:[%s3114_s10 + $0x8] sm:$0xff] %v2587_v54   ;;  %v1743_v9 = vadd.f32 %v1729_v41, %v1497_v3 }
 0x131   : > { %v1210_v6 = vpop.f32.mrf.mxu1  ;;  %v1731_v51 = vpop.f32.mrf.mxu0 }
 0x132   : > { %v1223_v7 = vadd.f32 %v1210_v6, %v977_v0  ;;  %v1755_v10 = vadd.f32 %v3105_v14, %v1743_v9  ;;  %v1734_v38 = vpop.f32.mrf.mxu2 }
 0x134   : > { %v1361_v11 = vadd.f32 %v1348_v40, %v1223_v7  ;;  %v1763_v18 = vmax.f32 %v1755_v10, 0.0 }
 0x136   : > { %v1498_v13 = vadd.f32 %v1485_v4, %v1361_v11 }
 0x138   : > { %v1744_v39 = vadd.f32 %v1731_v51, %v1498_v13 }
 0x139   : > { %v1213_v57 = vpop.f32.mrf.mxu1 }
 0x13a   : > { %v1756_v15 = vadd.f32 %v3105_v14, %v1744_v39  ;;  %v1224_v16 = vadd.f32 %v1213_v57, %v3094_v2  ;;  %v1736_v29 = vpop.f32.mrf.mxu2 }
 0x13c   : > { %v1764_v19 = vmax.f32 %v1756_v15, 0.0  ;;  %v1362_v20 = vadd.f32 %v1351_v52, %v1224_v16 }
 0x13e   : > { %v2592_v22 = vpack.c.bf16 %v1764_v19, %v1763_v18  ;;  %v1499_v25 = vadd.f32 %v1488_v55, %v1362_v20 }
 0x140   : > { %2600 = vst [vmem:[%s3114_s10 + $0x10] sm:$0xff] %v2592_v22   ;;  %v1745_v27 = vadd.f32 %v1734_v38, %v1499_v25 }
 0x141   : > { %v1215_v23 = vpop.f32.mrf.mxu1 }
 0x142   : > { %v1225_v12 = vadd.f32 %v1215_v23, %v979_v24  ;;  %v1757_v30 = vadd.f32 %v3105_v14, %v1745_v27 }
 0x144   : > { %v1363_v26 = vadd.f32 %v1353_v8, %v1225_v12  ;;  %v1765_v31 = vmax.f32 %v1757_v30, 0.0 }
 0x146   : > { %v1500_v2 = vadd.f32 %v1490_v28, %v1363_v26 }
 0x148   : > { %v1746_v58 = vadd.f32 %v1736_v29, %v1500_v2 }
 0x14a   : > { %v1758_v1 = vadd.f32 %v3105_v14, %v1746_v58 }
 0x14c   : > { %v1766_v32 = vmax.f32 %v1758_v1, 0.0 }
 0x14e   : > { %v2597_v33 = vpack.c.bf16 %v1766_v32, %v1765_v31 }
 0x150   : > { %2601 = vst [vmem:[%s3114_s10 + $0x18] sm:$0xff] %v2597_v33  }
 0x151 PF: > { %s13_s14 = sadd.s32 1, %s2666_s14   ;;  %s3150_s12 = smov %s2662_s13 }
 0x152   : > { %p10_p6 = scmp.ge.s32.totalorder %s13_s14, 4   ;;  %s3151_s13 = smov %s3153_s15 }
 0x154   :  { %12 = sbr.rel (!%p10_p6) target bundleno = 2 (0x2), region = 76 }

// kernel: fwd.5
= control target key start
LH: loop header
LB: loop body
LE: loop exit
PB: predicated region body
PF: predicated region fallthrough
CT: control target
= control target key end

     0   :  { %s891_s1 = inlined_call_operand.vmem [shape: bf16[128,128], index: 1, kind: input, shape index: {}]   ;;  %s892_s4 = inlined_call_operand.vmem [shape: bf16[128,128], index: 4, kind: input, shape index: {}]   ;;  %s893_s2 = inlined_call_operand.vmem [shape: f32[1,128], index: 2, kind: input, shape index: {}]   ;;  %s894_s0 = inlined_call_operand.vmem [shape: bf16[128,128], index: 0, kind: input, shape index: {}]   ;;  %s895_s3 = inlined_call_operand.vmem [shape: bf16[128,128], index: 3, kind: input, shape index: {}]   ;;  %s896_s5 = inlined_call_operand.vmem [shape: f32[1,128], index: 5, kind: input, shape index: {}]   ;;  %s897_s6 = inlined_call_operand.vmem [shape: bf16[128,128], index: 6, kind: output, shape index: {}]  }
   0x1   :  { %v612_v0 = vld [vmem:[%s891_s1 + $0x38] sm:$0xff]  ;;  %v611_v2 = vld [vmem:[%s891_s1 + $0x30] sm:$0xff]  ;;  %v610_v4 = vld [vmem:[%s891_s1 + $0x28] sm:$0xff] }
   0x2   :  { %v628_v1 = vld [vmem:[%s892_s4 + $0x38] sm:$0xff]  ;;  %155 = vmatpush.bf16.msra.mxu0 %v612_v0  ;;  %676 = vmatpush.bf16.msra.mxu2 %v612_v0  ;;  %v627_v3 = vld [vmem:[%s892_s4 + $0x30] sm:$0xff]  ;;  %v626_v5 = vld [vmem:[%s892_s4 + $0x28] sm:$0xff] }
   0x3   :  { %332 = vmatpush.bf16.msra.mxu1 %v628_v1  ;;  %684 = vmatpush.bf16.msra.mxu3 %v628_v1  ;;  %v609_v6 = vld [vmem:[%s891_s1 + $0x20] sm:$0xff]  ;;  %v608_v8 = vld [vmem:[%s891_s1 + $0x18] sm:$0xff]  ;;  %v607_v10 = vld [vmem:[%s891_s1 + $0x10] sm:$0xff] }
   0x4   :  { %v625_v7 = vld [vmem:[%s892_s4 + $0x20] sm:$0xff]  ;;  %v624_v9 = vld [vmem:[%s892_s4 + $0x18] sm:$0xff]  ;;  %v623_v11 = vld [vmem:[%s892_s4 + $0x10] sm:$0xff] }
   0x5   :  { %v606_v12 = vld [vmem:[%s891_s1 + $0x8] sm:$0xff]  ;;  %v605_v14 = vld [vmem:[%s891_s1] sm:$0xff]  ;;  %v599_v24 = vld [vmem:[%s894_s0 + $0x10] sm:$0xff] }
   0x6   :  { %156 = vmatpush.bf16.msra.mxu0 %v611_v2  ;;  %677 = vmatpush.bf16.msra.mxu2 %v611_v2  ;;  %v622_v13 = vld [vmem:[%s892_s4 + $0x8] sm:$0xff]  ;;  %v621_v15 = vld [vmem:[%s892_s4] sm:$0xff]  ;;  %v603_v25 = vld [vmem:[%s894_s0 + $0x30] sm:$0xff] }
   0x7   :  { %333 = vmatpush.bf16.msra.mxu1 %v627_v3  ;;  %685 = vmatpush.bf16.msra.mxu3 %v627_v3  ;;  %v597_v16 = vld [vmem:[%s894_s0] sm:$0xff]  ;;  %v598_v20 = vld [vmem:[%s894_s0 + $0x8] sm:$0xff]  ;;  %v615_v26 = vld [vmem:[%s895_s3 + $0x10] sm:$0xff] }
   0x8   :  { %v601_v17 = vld [vmem:[%s894_s0 + $0x20] sm:$0xff]  ;;  %v602_v21 = vld [vmem:[%s894_s0 + $0x28] sm:$0xff]  ;;  %v619_v27 = vld [vmem:[%s895_s3 + $0x30] sm:$0xff] }
   0x9   :  { %v613_v18 = vld [vmem:[%s895_s3] sm:$0xff]  ;;  %v614_v22 = vld [vmem:[%s895_s3 + $0x8] sm:$0xff]  ;;  %v600_v28 = vld [vmem:[%s894_s0 + $0x18] sm:$0xff] }
   0xa   :  { %157 = vmatpush.bf16.msra.mxu0 %v610_v4  ;;  %678 = vmatpush.bf16.msra.mxu2 %v610_v4  ;;  %v617_v19 = vld [vmem:[%s895_s3 + $0x20] sm:$0xff]  ;;  %v618_v23 = vld [vmem:[%s895_s3 + $0x28] sm:$0xff]  ;;  %v604_v29 = vld [vmem:[%s894_s0 + $0x38] sm:$0xff] }
   0xb   :  { %334 = vmatpush.bf16.msra.mxu1 %v626_v5  ;;  %686 = vmatpush.bf16.msra.mxu3 %v626_v5  ;;  %v616_v30 = vld [vmem:[%s895_s3 + $0x18] sm:$0xff]  ;;  %v828_v32 = vld [vmem:[%s893_s2] ss:$0 sm:$0xff] }
   0xc   :  { %v620_v31 = vld [vmem:[%s895_s3 + $0x38] sm:$0xff]  ;;  %v834_v38 = vld [vmem:[%s896_s5] ss:$0 sm:$0xff] }
   0xe   :  { %158 = vmatpush.bf16.msra.mxu0 %v609_v6  ;;  %679 = vmatpush.bf16.msra.mxu2 %v609_v6 }
   0xf   :  { %335 = vmatpush.bf16.msra.mxu1 %v625_v7  ;;  %687 = vmatpush.bf16.msra.mxu3 %v625_v7 }
  0x12   :  { %159 = vmatpush.bf16.msra.mxu0 %v608_v8  ;;  %680 = vmatpush.bf16.msra.mxu2 %v608_v8 }
  0x13   :  { %336 = vmatpush.bf16.msra.mxu1 %v624_v9  ;;  %688 = vmatpush.bf16.msra.mxu3 %v624_v9 }
  0x16   :  { %160 = vmatpush.bf16.msra.mxu0 %v607_v10  ;;  %681 = vmatpush.bf16.msra.mxu2 %v607_v10 }
  0x17   :  { %337 = vmatpush.bf16.msra.mxu1 %v623_v11  ;;  %689 = vmatpush.bf16.msra.mxu3 %v623_v11 }
  0x1a   :  { %161 = vmatpush.bf16.msra.mxu0 %v606_v12  ;;  %682 = vmatpush.bf16.msra.mxu2 %v606_v12 }
  0x1b   :  { %338 = vmatpush.bf16.msra.mxu1 %v622_v13  ;;  %690 = vmatpush.bf16.msra.mxu3 %v622_v13 }
  0x1e   :  { %162 = vmatpush.bf16.msra.mxu0 %v605_v14  ;;  %683 = vmatpush.bf16.msra.mxu2 %v605_v14 }
  0x1f   :  { %339 = vmatpush.bf16.msra.mxu1 %v621_v15  ;;  %691 = vmatpush.bf16.msra.mxu3 %v621_v15 }
  0x21   :  { %163 = vmatmul.bf16.vlgmr.msra.gmra.mxu0 %v597_v16  ;;  %183 = vmatmul.bf16.vlgmr.msra.gmra.mxu2 %v601_v17 }
  0x22   :  { %340 = vmatmul.bf16.vlgmr.msra.gmra.mxu1 %v613_v18  ;;  %360 = vmatmul.bf16.vlgmr.msra.gmra.mxu3 %v617_v19 }
  0x31   :  { %168 = vmatmul.bf16.gmra.mxu0 %v598_v20  ;;  %188 = vmatmul.bf16.gmra.mxu2 %v602_v21 }
  0x32   :  { %345 = vmatmul.bf16.gmra.mxu1 %v614_v22  ;;  %365 = vmatmul.bf16.gmra.mxu3 %v618_v23 }
  0x41   :  { %173 = vmatmul.bf16.gmra.mxu0 %v599_v24  ;;  %193 = vmatmul.bf16.gmra.mxu2 %v603_v25 }
  0x42   :  { %350 = vmatmul.bf16.gmra.mxu1 %v615_v26  ;;  %370 = vmatmul.bf16.gmra.mxu3 %v619_v27 }
  0x51   :  { %178 = vmatmul.bf16.gmra.mxu0 %v600_v28  ;;  %198 = vmatmul.bf16.gmra.mxu2 %v604_v29 }
  0x52   :  { %355 = vmatmul.bf16.gmra.mxu1 %v616_v30  ;;  %375 = vmatmul.bf16.gmra.mxu3 %v620_v31 }
  0x9e   :  { %v164_v33 = vpop.f32.mrf.mxu0 }
  0x9f   :  { %v341_v34 = vpop.f32.mrf.mxu1  ;;  %v165_v35 = vadd.f32 %v828_v32, %v164_v33 }
  0xa1   :  { %v381_v37 = vadd.f32 %v341_v34, %v165_v35 }
  0xa3   :  { %v401_v44 = vadd.f32 %v834_v38, %v381_v37 }
  0xa4   :  { %v184_v36 = vpop.f32.mrf.mxu2 }
  0xa5   :  { %v361_v39 = vpop.f32.mrf.mxu3  ;;  %v185_v41 = vadd.f32 %v828_v32, %v184_v36  ;;  %v417_v49 = vmax.f32 %v401_v44, 0.0 }
  0xa6   :  { %v166_v40 = vpop.f32.mrf.mxu0 }
  0xa7   :  { %v167_v42 = vadd.f32 %v828_v32, %v166_v40  ;;  %v343_v43 = vpop.f32.mrf.mxu1  ;;  %v389_v46 = vadd.f32 %v361_v39, %v185_v41 }
  0xa9   :  { %v382_v45 = vadd.f32 %v343_v43, %v167_v42  ;;  %v409_v54 = vadd.f32 %v834_v38, %v389_v46 }
  0xab   :  { %v402_v47 = vadd.f32 %v834_v38, %v382_v45  ;;  %v425_v60 = vmax.f32 %v409_v54, 0.0 }
  0xac   :  { %v186_v48 = vpop.f32.mrf.mxu2 }
  0xad   :  { %v418_v50 = vmax.f32 %v402_v47, 0.0  ;;  %v187_v51 = vadd.f32 %v828_v32, %v186_v48  ;;  %v363_v52 = vpop.f32.mrf.mxu3 }
  0xae   :  { %v169_v53 = vpop.f32.mrf.mxu0 }
  0xaf   :  { %v632_v55 = vpack.c.bf16 %v418_v50, %v417_v49  ;;  %v390_v56 = vadd.f32 %v363_v52, %v187_v51  ;;  %v346_v57 = vpop.f32.mrf.mxu1  ;;  %v170_v59 = vadd.f32 %v828_v32, %v169_v53 }
  0xb1   :  { %633 = vst [vmem:[%s897_s6] sm:$0xff] %v632_v55   ;;  %v410_v58 = vadd.f32 %v834_v38, %v390_v56  ;;  %v383_v0 = vadd.f32 %v346_v57, %v170_v59 }
  0xb3   :  { %v426_v61 = vmax.f32 %v410_v58, 0.0  ;;  %v403_v6 = vadd.f32 %v834_v38, %v383_v0 }
  0xb4   :  { %v189_v62 = vpop.f32.mrf.mxu2 }
  0xb5   :  { %v652_v63 = vpack.c.bf16 %v426_v61, %v425_v60  ;;  %v366_v1 = vpop.f32.mrf.mxu3  ;;  %v190_v3 = vadd.f32 %v828_v32, %v189_v62  ;;  %v419_v11 = vmax.f32 %v403_v6, 0.0 }
  0xb6   :  { %v171_v2 = vpop.f32.mrf.mxu0 }
  0xb7   :  { %672 = vst [vmem:[%s897_s6 + $0x20] sm:$0xff] %v652_v63   ;;  %v172_v4 = vadd.f32 %v828_v32, %v171_v2  ;;  %v348_v5 = vpop.f32.mrf.mxu1  ;;  %v391_v8 = vadd.f32 %v366_v1, %v190_v3 }
  0xb9   :  { %v384_v7 = vadd.f32 %v348_v5, %v172_v4  ;;  %v411_v16 = vadd.f32 %v834_v38, %v391_v8 }
  0xbb   :  { %v404_v9 = vadd.f32 %v834_v38, %v384_v7  ;;  %v427_v22 = vmax.f32 %v411_v16, 0.0 }
  0xbc   :  { %v191_v10 = vpop.f32.mrf.mxu2 }
  0xbd   :  { %v420_v12 = vmax.f32 %v404_v9, 0.0  ;;  %v192_v13 = vadd.f32 %v828_v32, %v191_v10  ;;  %v368_v14 = vpop.f32.mrf.mxu3 }
  0xbe   :  { %v174_v15 = vpop.f32.mrf.mxu0 }
  0xbf   :  { %v637_v17 = vpack.c.bf16 %v420_v12, %v419_v11  ;;  %v392_v18 = vadd.f32 %v368_v14, %v192_v13  ;;  %v351_v19 = vpop.f32.mrf.mxu1  ;;  %v175_v21 = vadd.f32 %v828_v32, %v174_v15 }
  0xc1   :  { %669 = vst [vmem:[%s897_s6 + $0x8] sm:$0xff] %v637_v17   ;;  %v412_v20 = vadd.f32 %v834_v38, %v392_v18  ;;  %v385_v26 = vadd.f32 %v351_v19, %v175_v21 }
  0xc3   :  { %v428_v23 = vmax.f32 %v412_v20, 0.0  ;;  %v405_v33 = vadd.f32 %v834_v38, %v385_v26 }
  0xc4   :  { %v194_v24 = vpop.f32.mrf.mxu2 }
  0xc5   :  { %v657_v25 = vpack.c.bf16 %v428_v23, %v427_v22  ;;  %v371_v27 = vpop.f32.mrf.mxu3  ;;  %v195_v29 = vadd.f32 %v828_v32, %v194_v24  ;;  %v421_v39 = vmax.f32 %v405_v33, 0.0 }
  0xc6   :  { %v176_v28 = vpop.f32.mrf.mxu0 }
  0xc7   :  { %673 = vst [vmem:[%s897_s6 + $0x28] sm:$0xff] %v657_v25   ;;  %v177_v30 = vadd.f32 %v828_v32, %v176_v28  ;;  %v353_v31 = vpop.f32.mrf.mxu1  ;;  %v393_v35 = vadd.f32 %v371_v27, %v195_v29 }
  0xc9   :  { %v386_v34 = vadd.f32 %v353_v31, %v177_v30  ;;  %v413_v44 = vadd.f32 %v834_v38, %v393_v35 }
  0xcb   :  { %v406_v36 = vadd.f32 %v834_v38, %v386_v34  ;;  %v429_v50 = vmax.f32 %v413_v44, 0.0 }
  0xcc   :  { %v196_v37 = vpop.f32.mrf.mxu2 }
  0xcd   :  { %v422_v40 = vmax.f32 %v406_v36, 0.0  ;;  %v197_v41 = vadd.f32 %v828_v32, %v196_v37  ;;  %v373_v42 = vpop.f32.mrf.mxu3 }
  0xce   :  { %v179_v43 = vpop.f32.mrf.mxu0 }
  0xcf   :  { %v642_v45 = vpack.c.bf16 %v422_v40, %v421_v39  ;;  %v394_v46 = vadd.f32 %v373_v42, %v197_v41  ;;  %v356_v47 = vpop.f32.mrf.mxu1  ;;  %v180_v49 = vadd.f32 %v828_v32, %v179_v43 }
  0xd1   :  { %670 = vst [vmem:[%s897_s6 + $0x10] sm:$0xff] %v642_v45   ;;  %v414_v48 = vadd.f32 %v834_v38, %v394_v46  ;;  %v387_v54 = vadd.f32 %v356_v47, %v180_v49 }
  0xd3   :  { %v430_v51 = vmax.f32 %v414_v48, 0.0  ;;  %v407_v60 = vadd.f32 %v834_v38, %v387_v54 }
  0xd4   :  { %v199_v52 = vpop.f32.mrf.mxu2 }
  0xd5   :  { %v662_v53 = vpack.c.bf16 %v430_v51, %v429_v50  ;;  %v376_v55 = vpop.f32.mrf.mxu3  ;;  %v200_v57 = vadd.f32 %v828_v32, %v199_v52  ;;  %v423_v1 = vmax.f32 %v407_v60, 0.0 }
  0xd6   :  { %v181_v56 = vpop.f32.mrf.mxu0 }
  0xd7   :  { %674 = vst [vmem:[%s897_s6 + $0x30] sm:$0xff] %v662_v53   ;;  %v182_v58 = vadd.f32 %v828_v32, %v181_v56  ;;  %v358_v59 = vpop.f32.mrf.mxu1  ;;  %v395_v62 = vadd.f32 %v376_v55, %v200_v57 }
  0xd9   :  { %v388_v61 = vadd.f32 %v358_v59, %v182_v58  ;;  %v415_v5 = vadd.f32 %v834_v38, %v395_v62 }
  0xdb   :  { %v408_v63 = vadd.f32 %v834_v38, %v388_v61  ;;  %v431_v9 = vmax.f32 %v415_v5, 0.0 }
  0xdc   :  { %v201_v0 = vpop.f32.mrf.mxu2 }
  0xdd   :  { %v424_v2 = vmax.f32 %v408_v63, 0.0  ;;  %v202_v3 = vadd.f32 %v828_v32, %v201_v0  ;;  %v378_v4 = vpop.f32.mrf.mxu3 }
  0xdf   :  { %v647_v6 = vpack.c.bf16 %v424_v2, %v423_v1  ;;  %v396_v7 = vadd.f32 %v378_v4, %v202_v3 }
  0xe1   :  { %671 = vst [vmem:[%s897_s6 + $0x18] sm:$0xff] %v647_v6   ;;  %v416_v8 = vadd.f32 %v834_v38, %v396_v7 }
  0xe3   :  { %v432_v10 = vmax.f32 %v416_v8, 0.0 }
  0xe5   :  { %v667_v11 = vpack.c.bf16 %v432_v10, %v431_v9 }
  0xe7   :  { %675 = vst [vmem:[%s897_s6 + $0x38] sm:$0xff] %v667_v11  }

</bundles_post_ra>
